<compile_context>
chip_gen: v6e
topology: v6e:2x2x1
jax: 0.10.0
libtpu: 0.0.40
codegen_flags: <defaults>
</compile_context>

<pallas_src>
import math

import jax
import jax.numpy as jnp
from jax.experimental import pallas as pl
from jax.experimental.pallas import tpu as pltpu

D_MODEL = 128
HEADS = 4
D_K = D_MODEL // HEADS
MIDDLE = 256                      # FeedForward middle_dim (scaled down from 2048)
EPS = 1e-5                        # nn.LayerNorm default
MXU_DTYPE = jnp.bfloat16          # matmul operand dtype (accumulation stays f32)
NEG_INF = -1e9                    # masked_fill value (exactly representable in f32)
TARGET_ROWS = 512                 # desired Bblk*Sq rows per grid step
VMEM_LIMIT_BYTES = 32 * 1024 * 1024  # explicit (v5e default is 16 MiB); headroom on v7x


# ---------------------------------------------------------------------------
# Kernel
# ---------------------------------------------------------------------------

def _layernorm(z, g, b):
    # f32 statistics, biased variance (matches torch.nn.LayerNorm)
    mu = jnp.mean(z, axis=-1, keepdims=True)
    var = jnp.mean((z - mu) * (z - mu), axis=-1, keepdims=True)
    return (z - mu) * jax.lax.rsqrt(var + EPS) * g + b


def _split_heads(t2d, bb, s):
    """(bb*s, D) f32 -> (HEADS*bb, s, D_K) bf16, (head, batch)-major leading dim.

    Built from 128-aligned lane slices + a leading-axis stack; avoids in-kernel
    transposes while still producing a head-batched operand for the MXU einsums.
    """
    t2d = t2d.astype(MXU_DTYPE)
    parts = [t2d[:, h * D_K:(h + 1) * D_K] for h in range(HEADS)]   # each (bb*s, D_K)
    return jnp.stack(parts, axis=0).reshape(HEADS * bb, s, D_K)


def _merge_heads(ctx, bb, sq):
    """(HEADS*bb, sq, D_K) f32 -> (bb*sq, D) with columns ordered (head, d_k)."""
    c = ctx.reshape(HEADS, bb * sq, D_K)
    return jnp.concatenate([c[h] for h in range(HEADS)], axis=-1)   # lane-dense D=128


def _mha(q2d, k2d, v2d, add_mask, bb, sq, sk):
    """Head-batched attention. q2d:(bb*sq,D) k2d/v2d:(bb*sk,D) add_mask:(bb,Sm,sk)."""
    qh = _split_heads(q2d, bb, sq)                                   # (H*bb, sq, D_K)
    kh = _split_heads(k2d, bb, sk)                                   # (H*bb, sk, D_K)
    vh = _split_heads(v2d, bb, sk)                                   # (H*bb, sk, D_K)
    s = jnp.einsum('bqd,bkd->bqk', qh, kh,
                   preferred_element_type=jnp.float32)               # (H*bb, sq, sk) f32
    # additive mask (built once in the wrapper), applied once for all heads
    s = s.reshape(HEADS, bb, sq, sk) + add_mask[None, :, :, :]
    s = s - jnp.max(s, axis=-1, keepdims=True)                       # stable softmax, f32
    p = jnp.exp(s)
    p = p * pl.reciprocal(jnp.sum(p, axis=-1, keepdims=True), approx=True)
    ctx = jnp.einsum('bqk,bkd->bqd',
                     p.reshape(HEADS * bb, sq, sk).astype(MXU_DTYPE), vh,
                     preferred_element_type=jnp.float32)             # (H*bb, sq, D_K)
    return _merge_heads(ctx, bb, sq)                                 # (bb*sq, D)


def _decoder_layer_kernel(
        x_ref, enc_ref, tmask_ref, smask_ref,
        wqkv_s_ref, bqkv_s_ref, wo_s_ref, bo_s_ref, g1_ref, be1_ref,
        wq_c_ref, bq_c_ref, wkv_c_ref, bkv_c_ref, wo_c_ref, bo_c_ref, g2_ref, be2_ref,
        w1_ref, bf1_ref, w2_ref, bf2_ref, g3_ref, be3_ref,
        o_ref):
    bb, sq, d = x_ref.shape
    sk = enc_ref.shape[1]
    scale = 1.0 / math.sqrt(D_K)

    x = x_ref[...].reshape(bb * sq, d)            # residual stream, f32
    enc = enc_ref[...].reshape(bb * sk, d)

    # ---- self-attention sublayer: fused QKV proj + MHA + out proj + residual + LN ----
    qkv = jnp.dot(x.astype(MXU_DTYPE), wqkv_s_ref[...],
                  preferred_element_type=jnp.float32) + bqkv_s_ref[...]
    ctx = _mha(qkv[:, :d] * scale, qkv[:, d:2 * d], qkv[:, 2 * d:],
               tmask_ref[...], bb, sq, sq)
    attn = jnp.dot(ctx.astype(MXU_DTYPE), wo_s_ref[...],
                   preferred_element_type=jnp.float32) + bo_s_ref[...]
    x = _layernorm(x + attn, g1_ref[...], be1_ref[...])

    # ---- cross-attention sublayer (Q from x, K/V from encoder output) ----
    q = (jnp.dot(x.astype(MXU_DTYPE), wq_c_ref[...],
                 preferred_element_type=jnp.float32) + bq_c_ref[...]) * scale
    kv = jnp.dot(enc.astype(MXU_DTYPE), wkv_c_ref[...],
                 preferred_element_type=jnp.float32) + bkv_c_ref[...]
    ctx = _mha(q, kv[:, :d], kv[:, d:], smask_ref[...], bb, sq, sk)
    attn = jnp.dot(ctx.astype(MXU_DTYPE), wo_c_ref[...],
                   preferred_element_type=jnp.float32) + bo_c_ref[...]
    x = _layernorm(x + attn, g2_ref[...], be2_ref[...])

    # ---- feed-forward sublayer: fc1 + ReLU + fc2 + residual + LN ----
    h = jnp.dot(x.astype(MXU_DTYPE), w1_ref[...],
                preferred_element_type=jnp.float32) + bf1_ref[...]
    h = jnp.maximum(h, 0.0)
    y = jnp.dot(h.astype(MXU_DTYPE), w2_ref[...],
                preferred_element_type=jnp.float32) + bf2_ref[...]
    x = _layernorm(x + y, g3_ref[...], be3_ref[...])

    o_ref[...] = x.reshape(bb, sq, d)


# ---------------------------------------------------------------------------
# Wrapper
# ---------------------------------------------------------------------------

def _pick_batch_block(batch, sq):
    """Batch elements per grid step: big steps, but >=2 grid steps when B >= 2."""
    bblk = max(1, min(batch, TARGET_ROWS // max(sq, 1)))
    if batch >= 2:
        bblk = max(1, min(bblk, batch // 2))     # keep both v7x TensorCores busy
    while batch % bblk:                          # blocks must tile B exactly
        bblk -= 1
    return bblk


def _additive_mask(mask, batch, sk):
    """(B,1,Sm,Sk)-broadcastable 0/1 mask -> additive f32 mask (B, Sm, Sk)."""
    m = jnp.asarray(mask, jnp.float32)
    sm = m.shape[2]
    m = jnp.broadcast_to(m, (batch, 1, sm, sk)).reshape(batch, sm, sk)
    return jnp.where(m == 0.0, jnp.float32(NEG_INF), jnp.float32(0.0))


def decoder_layer(params, x, enc_output, src_mask, tgt_mask):
    # dropout1/2/3 and the attention/FFN internal dropouts are identity (eval mode)
    B, Sq, D = x.shape
    Sk = enc_output.shape[1]
    M = params["w1"].shape[1]
    bblk = _pick_batch_block(B, Sq)

    tmask = _additive_mask(tgt_mask, B, Sq)       # (B, Tm, Sq), Tm in {1, Sq}
    smask = _additive_mask(src_mask, B, Sk)       # (B, Sm, Sk), Sm in {1, Sq}
    Tm, Sm = tmask.shape[1], smask.shape[1]

    ps, pc = params["self_mha"], params["src_mha"]
    # weights pre-cast to bf16 once here (no per-grid-step casts, half the DMA bytes)
    wqkv_s = ps["wqkv"].astype(MXU_DTYPE)
    wo_s = ps["wo"].astype(MXU_DTYPE)
    wq_c = pc["wqkv"][:, :D].astype(MXU_DTYPE)
    wkv_c = pc["wqkv"][:, D:].astype(MXU_DTYPE)
    wo_c = pc["wo"].astype(MXU_DTYPE)
    w1 = params["w1"].astype(MXU_DTYPE)
    w2 = params["w2"].astype(MXU_DTYPE)
    bq_c = pc["bqkv"][:, :D]
    bkv_c = pc["bqkv"][:, D:]

    batched = lambda i: (i, 0, 0)                 # per-batch-block activations / masks
    const = lambda i: (0, 0)                      # weights stay VMEM-resident

    in_specs = [
        pl.BlockSpec((bblk, Sq, D), batched),     # x
        pl.BlockSpec((bblk, Sk, D), batched),     # enc_output
        pl.BlockSpec((bblk, Tm, Sq), batched),    # additive tgt mask
        pl.BlockSpec((bblk, Sm, Sk), batched),    # additive src mask
        pl.BlockSpec((D, 3 * D), const),          # self-attn wqkv (bf16)
        pl.BlockSpec((1, 3 * D), const),          # self-attn bqkv
        pl.BlockSpec((D, D), const),              # self-attn wo (bf16)
        pl.BlockSpec((1, D), const),              # self-attn bo
        pl.BlockSpec((1, D), const),              # ln1 gamma
        pl.BlockSpec((1, D), const),              # ln1 beta
        pl.BlockSpec((D, D), const),              # cross-attn wq (bf16)
        pl.BlockSpec((1, D), const),              # cross-attn bq
        pl.BlockSpec((D, 2 * D), const),          # cross-attn wkv (bf16)
        pl.BlockSpec((1, 2 * D), const),          # cross-attn bkv
        pl.BlockSpec((D, D), const),              # cross-attn wo (bf16)
        pl.BlockSpec((1, D), const),              # cross-attn bo
        pl.BlockSpec((1, D), const),              # ln2 gamma
        pl.BlockSpec((1, D), const),              # ln2 beta
        pl.BlockSpec((D, M), const),              # ffn w1 (bf16)
        pl.BlockSpec((1, M), const),              # ffn b1
        pl.BlockSpec((M, D), const),              # ffn w2 (bf16)
        pl.BlockSpec((1, D), const),              # ffn b2
        pl.BlockSpec((1, D), const),              # ln3 gamma
        pl.BlockSpec((1, D), const),              # ln3 beta
    ]

    return pl.pallas_call(
        _decoder_layer_kernel,
        out_shape=jax.ShapeDtypeStruct((B, Sq, D), jnp.float32),
        grid=(B // bblk,),
        in_specs=in_specs,
        out_specs=pl.BlockSpec((bblk, Sq, D), batched),
        compiler_params=pltpu.CompilerParams(
            dimension_semantics=("parallel",),
            vmem_limit_bytes=VMEM_LIMIT_BYTES),
    )(x, enc_output, tmask, smask,
      wqkv_s, ps["bqkv"], wo_s, ps["bo"], params["ln1_g"], params["ln1_b"],
      wq_c, bq_c, wkv_c, bkv_c, wo_c, pc["bo"], params["ln2_g"], params["ln2_b"],
      w1, params["b1"], w2, params["b2"], params["ln3_g"], params["ln3_b"])


# ---------------------------------------------------------------------------
# Deterministic parameter initialization (PyTorch nn.Linear-style uniform)
# ---------------------------------------------------------------------------

def _init_linear(key, din, dout):
    kw, kb = jax.random.split(key)
    bound = 1.0 / math.sqrt(din)
    w = jax.random.uniform(kw, (din, dout), jnp.float32, -bound, bound)
    b = jax.random.uniform(kb, (1, dout), jnp.float32, -bound, bound)
    return w, b


def _init_mha(key):
    ks = jax.random.split(key, 4)
    wq, bq = _init_linear(ks[0], D_MODEL, D_MODEL)
    wk, bk = _init_linear(ks[1], D_MODEL, D_MODEL)
    wv, bv = _init_linear(ks[2], D_MODEL, D_MODEL)
    wo, bo = _init_linear(ks[3], D_MODEL, D_MODEL)
    return dict(wqkv=jnp.concatenate([wq, wk, wv], axis=1),
                bqkv=jnp.concatenate([bq, bk, bv], axis=1),
                wo=wo, bo=bo)


def init_params(key):
    ks = jax.random.split(key, 4)
    w1, b1 = _init_linear(ks[2], D_MODEL, MIDDLE)
    w2, b2 = _init_linear(ks[3], MIDDLE, D_MODEL)
    return dict(
        self_mha=_init_mha(ks[0]),
        src_mha=_init_mha(ks[1]),
        w1=w1, b1=b1, w2=w2, b2=b2,
        ln1_g=jnp.ones((1, D_MODEL), jnp.float32), ln1_b=jnp.zeros((1, D_MODEL), jnp.float32),
        ln2_g=jnp.ones((1, D_MODEL), jnp.float32), ln2_b=jnp.zeros((1, D_MODEL), jnp.float32),
        ln3_g=jnp.ones((1, D_MODEL), jnp.float32), ln3_b=jnp.zeros((1, D_MODEL), jnp.float32),
    )


# ---------------------------------------------------------------------------
# Pure-JAX f32 reference (matches the PyTorch forward semantics)
# ---------------------------------------------------------------------------

def _mha_ref(p, x_q, x_kv, mask):
    B, Sq, D = x_q.shape
    Sk = x_kv.shape[1]
    wq, wk, wv = jnp.split(p["wqkv"], 3, axis=1)
    bq, bk, bv = jnp.split(p["bqkv"], 3, axis=1)
    q = (x_q @ wq + bq).reshape(B, Sq, HEADS, D_K).transpose(0, 2, 1, 3)
    k = (x_kv @ wk + bk).reshape(B, Sk, HEADS, D_K).transpose(0, 2, 1, 3)
    v = (x_kv @ wv + bv).reshape(B, Sk, HEADS, D_K).transpose(0, 2, 1, 3)
    s = (q @ k.transpose(0, 1, 3, 2)) / math.sqrt(D_K)
    s = jnp.where(mask == 0, -1e9, s)
    w = jax.nn.softmax(s, axis=-1)
    ctx = (w @ v).transpose(0, 2, 1, 3).reshape(B, Sq, D)
    return ctx @ p["wo"] + p["bo"]


def _ln_ref(z, g, b):
    mu = z.mean(-1, keepdims=True)
    var = ((z - mu) ** 2).mean(-1, keepdims=True)
    return (z - mu) / jnp.sqrt(var + EPS) * g + b


def decoder_layer_ref(params, x, enc, src_mask, tgt_mask):
    x = _ln_ref(x + _mha_ref(params["self_mha"], x, x, tgt_mask),
                params["ln1_g"], params["ln1_b"])
    x = _ln_ref(x + _mha_ref(params["src_mha"], x, enc, src_mask),
                params["ln2_g"], params["ln2_b"])
    h = jnp.maximum(x @ params["w1"] + params["b1"], 0.0)
    ff = h @ params["w2"] + params["b2"]
    return _ln_ref(x + ff, params["ln3_g"], params["ln3_b"])


if __name__ == "__main__":
    B, S_TGT, S_SRC = 2, 8, 16

    root = jax.random.PRNGKey(0)
    k_params, k_x, k_enc = jax.random.split(root, 3)

    params = init_params(k_params)
    x = jax.random.normal(k_x, (B, S_TGT, D_MODEL), jnp.float32)
    enc_output = jax.random.normal(k_enc, (B, S_SRC, D_MODEL), jnp.float32)

    # causal target mask (B,1,S_tgt,S_tgt), full source mask (B,1,1,S_src)
    tgt_mask = jnp.broadcast_to(
        jnp.tril(jnp.ones((S_TGT, S_TGT), jnp.float32))[None, None],
        (B, 1, S_TGT, S_TGT))
    src_mask = jnp.ones((B, 1, 1, S_SRC), jnp.float32)

    out = jax.block_until_ready(decoder_layer(params, x, enc_output, src_mask, tgt_mask))
    assert out.shape == (B, S_TGT, D_MODEL)
    assert bool(jnp.all(jnp.isfinite(out)))

    # loose tolerance: kernel uses bf16 MXU operands (f32 accum) + approx reciprocal,
    # reference is pure f32
    ref = decoder_layer_ref(params, x, enc_output, src_mask, tgt_mask)
    assert float(jnp.max(jnp.abs(out - ref))) < 0.2

    print("KERNEL_OK")
</pallas_src>

<mosaic_0001>
module attributes {stable_mosaic.version = 11 : i64} {
  func.func @_decoder_layer_kernel(%arg0: i32, %arg1: memref<1x8x128xf32, #tpu.memory_space<vmem>>, %arg2: memref<1x16x128xf32, #tpu.memory_space<vmem>>, %arg3: memref<1x8x8xf32, #tpu.memory_space<vmem>>, %arg4: memref<1x1x16xf32, #tpu.memory_space<vmem>>, %arg5: memref<128x384xbf16, #tpu.memory_space<vmem>>, %arg6: memref<1x384xf32, #tpu.memory_space<vmem>>, %arg7: memref<128x128xbf16, #tpu.memory_space<vmem>>, %arg8: memref<1x128xf32, #tpu.memory_space<vmem>>, %arg9: memref<1x128xf32, #tpu.memory_space<vmem>>, %arg10: memref<1x128xf32, #tpu.memory_space<vmem>>, %arg11: memref<128x128xbf16, #tpu.memory_space<vmem>>, %arg12: memref<1x128xf32, #tpu.memory_space<vmem>>, %arg13: memref<128x256xbf16, #tpu.memory_space<vmem>>, %arg14: memref<1x256xf32, #tpu.memory_space<vmem>>, %arg15: memref<128x128xbf16, #tpu.memory_space<vmem>>, %arg16: memref<1x128xf32, #tpu.memory_space<vmem>>, %arg17: memref<1x128xf32, #tpu.memory_space<vmem>>, %arg18: memref<1x128xf32, #tpu.memory_space<vmem>>, %arg19: memref<128x256xbf16, #tpu.memory_space<vmem>>, %arg20: memref<1x256xf32, #tpu.memory_space<vmem>>, %arg21: memref<256x128xbf16, #tpu.memory_space<vmem>>, %arg22: memref<1x128xf32, #tpu.memory_space<vmem>>, %arg23: memref<1x128xf32, #tpu.memory_space<vmem>>, %arg24: memref<1x128xf32, #tpu.memory_space<vmem>>, %arg25: memref<1x8x128xf32, #tpu.memory_space<vmem>>) attributes {dimension_semantics = [#tpu.dimension_semantics<parallel>], iteration_bounds = array<i64: 2>, scalar_prefetch = 0 : i64, scratch_operands = 0 : i64, tpu.core_type = #tpu.core_type<tc>, window_params = [{transform_indices = @transform_0, window_bounds = array<i64: 1, 8, 128>}, {transform_indices = @transform_1, window_bounds = array<i64: 1, 16, 128>}, {transform_indices = @transform_2, window_bounds = array<i64: 1, 8, 8>}, {transform_indices = @transform_3, window_bounds = array<i64: 1, 1, 16>}, {pipeline_mode = #tpu.pipeline_mode<synchronous>, transform_indices = @transform_4, window_bounds = array<i64: 128, 384>}, {pipeline_mode = #tpu.pipeline_mode<synchronous>, transform_indices = @transform_5, window_bounds = array<i64: 1, 384>}, {pipeline_mode = #tpu.pipeline_mode<synchronous>, transform_indices = @transform_6, window_bounds = array<i64: 128, 128>}, {pipeline_mode = #tpu.pipeline_mode<synchronous>, transform_indices = @transform_7, window_bounds = array<i64: 1, 128>}, {pipeline_mode = #tpu.pipeline_mode<synchronous>, transform_indices = @transform_8, window_bounds = array<i64: 1, 128>}, {pipeline_mode = #tpu.pipeline_mode<synchronous>, transform_indices = @transform_9, window_bounds = array<i64: 1, 128>}, {pipeline_mode = #tpu.pipeline_mode<synchronous>, transform_indices = @transform_10, window_bounds = array<i64: 128, 128>}, {pipeline_mode = #tpu.pipeline_mode<synchronous>, transform_indices = @transform_11, window_bounds = array<i64: 1, 128>}, {pipeline_mode = #tpu.pipeline_mode<synchronous>, transform_indices = @transform_12, window_bounds = array<i64: 128, 256>}, {pipeline_mode = #tpu.pipeline_mode<synchronous>, transform_indices = @transform_13, window_bounds = array<i64: 1, 256>}, {pipeline_mode = #tpu.pipeline_mode<synchronous>, transform_indices = @transform_14, window_bounds = array<i64: 128, 128>}, {pipeline_mode = #tpu.pipeline_mode<synchronous>, transform_indices = @transform_15, window_bounds = array<i64: 1, 128>}, {pipeline_mode = #tpu.pipeline_mode<synchronous>, transform_indices = @transform_16, window_bounds = array<i64: 1, 128>}, {pipeline_mode = #tpu.pipeline_mode<synchronous>, transform_indices = @transform_17, window_bounds = array<i64: 1, 128>}, {pipeline_mode = #tpu.pipeline_mode<synchronous>, transform_indices = @transform_18, window_bounds = array<i64: 128, 256>}, {pipeline_mode = #tpu.pipeline_mode<synchronous>, transform_indices = @transform_19, window_bounds = array<i64: 1, 256>}, {pipeline_mode = #tpu.pipeline_mode<synchronous>, transform_indices = @transform_20, window_bounds = array<i64: 256, 128>}, {pipeline_mode = #tpu.pipeline_mode<synchronous>, transform_indices = @transform_21, window_bounds = array<i64: 1, 128>}, {pipeline_mode = #tpu.pipeline_mode<synchronous>, transform_indices = @transform_22, window_bounds = array<i64: 1, 128>}, {pipeline_mode = #tpu.pipeline_mode<synchronous>, transform_indices = @transform_23, window_bounds = array<i64: 1, 128>}, {transform_indices = @transform_24, window_bounds = array<i64: 1, 8, 128>}]} {
    %c0 = arith.constant 0 : index
    %c0_0 = arith.constant 0 : index
    %c0_1 = arith.constant 0 : index
    %0 = vector.load %arg1[%c0, %c0_0, %c0_1] : memref<1x8x128xf32, #tpu.memory_space<vmem>>, vector<1x8x128xf32>
    %1 = vector.shape_cast %0 : vector<1x8x128xf32> to vector<8x128xf32>
    %c0_2 = arith.constant 0 : index
    %c0_3 = arith.constant 0 : index
    %c0_4 = arith.constant 0 : index
    %2 = vector.load %arg2[%c0_2, %c0_3, %c0_4] : memref<1x16x128xf32, #tpu.memory_space<vmem>>, vector<1x16x128xf32>
    %3 = vector.shape_cast %2 : vector<1x16x128xf32> to vector<16x128xf32>
    %4 = arith.truncf %1 : vector<8x128xf32> to vector<8x128xbf16>
    %c0_5 = arith.constant 0 : index
    %c0_6 = arith.constant 0 : index
    %5 = vector.load %arg5[%c0_5, %c0_6] : memref<128x384xbf16, #tpu.memory_space<vmem>>, vector<128x384xbf16>
    %cst = arith.constant dense<0.000000e+00> : vector<8x384xf32>
    %6 = tpu.matmul %4, %5, %cst {dimension_numbers = #tpu.dot_dimension_numbers<[1], [0], [0], [1], [0, 0, 1, 1], [], []>} : vector<8x128xbf16>, vector<128x384xbf16>, vector<8x384xf32> -> vector<8x384xf32>
    %c0_7 = arith.constant 0 : index
    %c0_8 = arith.constant 0 : index
    %7 = vector.load %arg6[%c0_7, %c0_8] : memref<1x384xf32, #tpu.memory_space<vmem>>, vector<1x384xf32>
    %8 = vector.broadcast %7 : vector<1x384xf32> to vector<8x384xf32>
    %9 = arith.addf %6, %8 : vector<8x384xf32>
    %10 = vector.extract_strided_slice %9 {offsets = [0, 0], sizes = [8, 128], strides = [1, 1]} : vector<8x384xf32> to vector<8x128xf32>
    %cst_9 = arith.constant 0.176776692 : f32
    %11 = vector.broadcast %cst_9 : f32 to vector<8x128xf32>
    %12 = arith.mulf %10, %11 : vector<8x128xf32>
    %13 = vector.extract_strided_slice %9 {offsets = [0, 128], sizes = [8, 128], strides = [1, 1]} : vector<8x384xf32> to vector<8x128xf32>
    %14 = vector.extract_strided_slice %9 {offsets = [0, 256], sizes = [8, 128], strides = [1, 1]} : vector<8x384xf32> to vector<8x128xf32>
    %c0_10 = arith.constant 0 : index
    %c0_11 = arith.constant 0 : index
    %c0_12 = arith.constant 0 : index
    %15 = vector.load %arg3[%c0_10, %c0_11, %c0_12] : memref<1x8x8xf32, #tpu.memory_space<vmem>>, vector<1x8x8xf32>
    %16 = arith.truncf %12 : vector<8x128xf32> to vector<8x128xbf16>
    %17 = vector.extract_strided_slice %16 {offsets = [0, 0], sizes = [8, 32], strides = [1, 1]} : vector<8x128xbf16> to vector<8x32xbf16>
    %18 = vector.extract_strided_slice %16 {offsets = [0, 32], sizes = [8, 32], strides = [1, 1]} : vector<8x128xbf16> to vector<8x32xbf16>
    %19 = vector.extract_strided_slice %16 {offsets = [0, 64], sizes = [8, 32], strides = [1, 1]} : vector<8x128xbf16> to vector<8x32xbf16>
    %20 = vector.extract_strided_slice %16 {offsets = [0, 96], sizes = [8, 32], strides = [1, 1]} : vector<8x128xbf16> to vector<8x32xbf16>
    %21 = vector.shape_cast %17 : vector<8x32xbf16> to vector<1x8x32xbf16>
    %22 = vector.shape_cast %18 : vector<8x32xbf16> to vector<1x8x32xbf16>
    %23 = vector.shape_cast %19 : vector<8x32xbf16> to vector<1x8x32xbf16>
    %24 = vector.shape_cast %20 : vector<8x32xbf16> to vector<1x8x32xbf16>
    %25 = tpu.concatenate %21, %22, %23, %24 in 0 : vector<1x8x32xbf16>, vector<1x8x32xbf16>, vector<1x8x32xbf16>, vector<1x8x32xbf16> -> vector<4x8x32xbf16>
    %26 = arith.truncf %13 : vector<8x128xf32> to vector<8x128xbf16>
    %27 = vector.extract_strided_slice %26 {offsets = [0, 0], sizes = [8, 32], strides = [1, 1]} : vector<8x128xbf16> to vector<8x32xbf16>
    %28 = vector.extract_strided_slice %26 {offsets = [0, 32], sizes = [8, 32], strides = [1, 1]} : vector<8x128xbf16> to vector<8x32xbf16>
    %29 = vector.extract_strided_slice %26 {offsets = [0, 64], sizes = [8, 32], strides = [1, 1]} : vector<8x128xbf16> to vector<8x32xbf16>
    %30 = vector.extract_strided_slice %26 {offsets = [0, 96], sizes = [8, 32], strides = [1, 1]} : vector<8x128xbf16> to vector<8x32xbf16>
    %31 = vector.shape_cast %27 : vector<8x32xbf16> to vector<1x8x32xbf16>
    %32 = vector.shape_cast %28 : vector<8x32xbf16> to vector<1x8x32xbf16>
    %33 = vector.shape_cast %29 : vector<8x32xbf16> to vector<1x8x32xbf16>
    %34 = vector.shape_cast %30 : vector<8x32xbf16> to vector<1x8x32xbf16>
    %35 = tpu.concatenate %31, %32, %33, %34 in 0 : vector<1x8x32xbf16>, vector<1x8x32xbf16>, vector<1x8x32xbf16>, vector<1x8x32xbf16> -> vector<4x8x32xbf16>
    %36 = arith.truncf %14 : vector<8x128xf32> to vector<8x128xbf16>
    %37 = vector.extract_strided_slice %36 {offsets = [0, 0], sizes = [8, 32], strides = [1, 1]} : vector<8x128xbf16> to vector<8x32xbf16>
    %38 = vector.extract_strided_slice %36 {offsets = [0, 32], sizes = [8, 32], strides = [1, 1]} : vector<8x128xbf16> to vector<8x32xbf16>
    %39 = vector.extract_strided_slice %36 {offsets = [0, 64], sizes = [8, 32], strides = [1, 1]} : vector<8x128xbf16> to vector<8x32xbf16>
    %40 = vector.extract_strided_slice %36 {offsets = [0, 96], sizes = [8, 32], strides = [1, 1]} : vector<8x128xbf16> to vector<8x32xbf16>
    %41 = vector.shape_cast %37 : vector<8x32xbf16> to vector<1x8x32xbf16>
    %42 = vector.shape_cast %38 : vector<8x32xbf16> to vector<1x8x32xbf16>
    %43 = vector.shape_cast %39 : vector<8x32xbf16> to vector<1x8x32xbf16>
    %44 = vector.shape_cast %40 : vector<8x32xbf16> to vector<1x8x32xbf16>
    %45 = tpu.concatenate %41, %42, %43, %44 in 0 : vector<1x8x32xbf16>, vector<1x8x32xbf16>, vector<1x8x32xbf16>, vector<1x8x32xbf16> -> vector<4x8x32xbf16>
    "tpu.trace_start"() <{level = 10 : i32, message = "bqd,bkd->bqk"}> : () -> ()
    %cst_13 = arith.constant dense<0.000000e+00> : vector<4x8x8xf32>
    %46 = tpu.matmul %25, %35, %cst_13 {dimension_numbers = #tpu.dot_dimension_numbers<[2], [2], [1], [1], [0, 0, 0, 1, 1, 1], [0], [0]>} : vector<4x8x32xbf16>, vector<4x8x32xbf16>, vector<4x8x8xf32> -> vector<4x8x8xf32>
    "tpu.trace_stop"() : () -> ()
    %47 = vector.shape_cast %46 : vector<4x8x8xf32> to vector<4x1x8x8xf32>
    %48 = vector.shape_cast %15 : vector<1x8x8xf32> to vector<1x1x8x8xf32>
    %49 = vector.broadcast %48 : vector<1x1x8x8xf32> to vector<4x1x8x8xf32>
    %50 = arith.addf %47, %49 : vector<4x1x8x8xf32>
    %cst_14 = arith.constant dense<0xFF800000> : vector<4x1x8xf32>
    %51 = vector.multi_reduction <maximumf>, %50, %cst_14 [3] : vector<4x1x8x8xf32> to vector<4x1x8xf32>
    %52 = vector.shape_cast %51 : vector<4x1x8xf32> to vector<4x1x8x1xf32>
    %53 = vector.broadcast %52 : vector<4x1x8x1xf32> to vector<4x1x8x8xf32>
    %54 = arith.subf %50, %53 : vector<4x1x8x8xf32>
    %55 = math.exp %54 : vector<4x1x8x8xf32>
    %cst_15 = arith.constant dense<0.000000e+00> : vector<4x1x8xf32>
    %56 = vector.multi_reduction <add>, %55, %cst_15 [3] : vector<4x1x8x8xf32> to vector<4x1x8xf32>
    %57 = vector.shape_cast %56 : vector<4x1x8xf32> to vector<4x1x8x1xf32>
    %58 = tpu.reciprocal %57 {approx = true} : vector<4x1x8x1xf32> -> vector<4x1x8x1xf32>
    %59 = vector.broadcast %58 : vector<4x1x8x1xf32> to vector<4x1x8x8xf32>
    %60 = arith.mulf %55, %59 : vector<4x1x8x8xf32>
    %61 = vector.shape_cast %60 : vector<4x1x8x8xf32> to vector<4x8x8xf32>
    %62 = arith.truncf %61 : vector<4x8x8xf32> to vector<4x8x8xbf16>
    "tpu.trace_start"() <{level = 10 : i32, message = "bqk,bkd->bqd"}> : () -> ()
    %cst_16 = arith.constant dense<0.000000e+00> : vector<4x8x32xf32>
    %63 = tpu.matmul %62, %45, %cst_16 {dimension_numbers = #tpu.dot_dimension_numbers<[2], [1], [1], [2], [0, 0, 0, 1, 1, 2], [0], [0]>} : vector<4x8x8xbf16>, vector<4x8x32xbf16>, vector<4x8x32xf32> -> vector<4x8x32xf32>
    "tpu.trace_stop"() : () -> ()
    %64 = vector.extract_strided_slice %63 {offsets = [0, 0, 0], sizes = [1, 8, 32], strides = [1, 1, 1]} : vector<4x8x32xf32> to vector<1x8x32xf32>
    %65 = vector.shape_cast %64 : vector<1x8x32xf32> to vector<8x32xf32>
    %66 = vector.extract_strided_slice %63 {offsets = [1, 0, 0], sizes = [1, 8, 32], strides = [1, 1, 1]} : vector<4x8x32xf32> to vector<1x8x32xf32>
    %67 = vector.shape_cast %66 : vector<1x8x32xf32> to vector<8x32xf32>
    %68 = vector.extract_strided_slice %63 {offsets = [2, 0, 0], sizes = [1, 8, 32], strides = [1, 1, 1]} : vector<4x8x32xf32> to vector<1x8x32xf32>
    %69 = vector.shape_cast %68 : vector<1x8x32xf32> to vector<8x32xf32>
    %70 = vector.extract_strided_slice %63 {offsets = [3, 0, 0], sizes = [1, 8, 32], strides = [1, 1, 1]} : vector<4x8x32xf32> to vector<1x8x32xf32>
    %71 = vector.shape_cast %70 : vector<1x8x32xf32> to vector<8x32xf32>
    %72 = tpu.concatenate %65, %67, %69, %71 in 1 : vector<8x32xf32>, vector<8x32xf32>, vector<8x32xf32>, vector<8x32xf32> -> vector<8x128xf32>
    %73 = arith.truncf %72 : vector<8x128xf32> to vector<8x128xbf16>
    %c0_17 = arith.constant 0 : index
    %c0_18 = arith.constant 0 : index
    %74 = vector.load %arg7[%c0_17, %c0_18] : memref<128x128xbf16, #tpu.memory_space<vmem>>, vector<128x128xbf16>
    %cst_19 = arith.constant dense<0.000000e+00> : vector<8x128xf32>
    %75 = tpu.matmul %73, %74, %cst_19 {dimension_numbers = #tpu.dot_dimension_numbers<[1], [0], [0], [1], [0, 0, 1, 1], [], []>} : vector<8x128xbf16>, vector<128x128xbf16>, vector<8x128xf32> -> vector<8x128xf32>
    %c0_20 = arith.constant 0 : index
    %c0_21 = arith.constant 0 : index
    %76 = vector.load %arg8[%c0_20, %c0_21] : memref<1x128xf32, #tpu.memory_space<vmem>>, vector<1x128xf32>
    %77 = vector.broadcast %76 : vector<1x128xf32> to vector<8x128xf32>
    %78 = arith.addf %75, %77 : vector<8x128xf32>
    %79 = arith.addf %1, %78 : vector<8x128xf32>
    %c0_22 = arith.constant 0 : index
    %c0_23 = arith.constant 0 : index
    %80 = vector.load %arg9[%c0_22, %c0_23] : memref<1x128xf32, #tpu.memory_space<vmem>>, vector<1x128xf32>
    %c0_24 = arith.constant 0 : index
    %c0_25 = arith.constant 0 : index
    %81 = vector.load %arg10[%c0_24, %c0_25] : memref<1x128xf32, #tpu.memory_space<vmem>>, vector<1x128xf32>
    %cst_26 = arith.constant dense<0.000000e+00> : vector<8xf32>
    %82 = vector.multi_reduction <add>, %79, %cst_26 [1] : vector<8x128xf32> to vector<8xf32>
    %83 = vector.shape_cast %82 : vector<8xf32> to vector<8x1xf32>
    %cst_27 = arith.constant 1.280000e+02 : f32
    %84 = vector.broadcast %cst_27 : f32 to vector<8x1xf32>
    %85 = arith.divf %83, %84 : vector<8x1xf32>
    %86 = vector.broadcast %85 : vector<8x1xf32> to vector<8x128xf32>
    %87 = arith.subf %79, %86 : vector<8x128xf32>
    %88 = vector.broadcast %85 : vector<8x1xf32> to vector<8x128xf32>
    %89 = arith.subf %79, %88 : vector<8x128xf32>
    %90 = arith.mulf %87, %89 : vector<8x128xf32>
    %cst_28 = arith.constant dense<0.000000e+00> : vector<8xf32>
    %91 = vector.multi_reduction <add>, %90, %cst_28 [1] : vector<8x128xf32> to vector<8xf32>
    %92 = vector.shape_cast %91 : vector<8xf32> to vector<8x1xf32>
    %cst_29 = arith.constant 1.280000e+02 : f32
    %93 = vector.broadcast %cst_29 : f32 to vector<8x1xf32>
    %94 = arith.divf %92, %93 : vector<8x1xf32>
    %95 = vector.broadcast %85 : vector<8x1xf32> to vector<8x128xf32>
    %96 = arith.subf %79, %95 : vector<8x128xf32>
    %cst_30 = arith.constant 9.99999974E-6 : f32
    %97 = vector.broadcast %cst_30 : f32 to vector<8x1xf32>
    %98 = arith.addf %94, %97 : vector<8x1xf32>
    %99 = math.rsqrt %98 : vector<8x1xf32>
    %100 = vector.broadcast %99 : vector<8x1xf32> to vector<8x128xf32>
    %101 = arith.mulf %96, %100 : vector<8x128xf32>
    %102 = vector.broadcast %80 : vector<1x128xf32> to vector<8x128xf32>
    %103 = arith.mulf %101, %102 : vector<8x128xf32>
    %104 = vector.broadcast %81 : vector<1x128xf32> to vector<8x128xf32>
    %105 = arith.addf %103, %104 : vector<8x128xf32>
    %106 = arith.truncf %105 : vector<8x128xf32> to vector<8x128xbf16>
    %c0_31 = arith.constant 0 : index
    %c0_32 = arith.constant 0 : index
    %107 = vector.load %arg11[%c0_31, %c0_32] : memref<128x128xbf16, #tpu.memory_space<vmem>>, vector<128x128xbf16>
    %cst_33 = arith.constant dense<0.000000e+00> : vector<8x128xf32>
    %108 = tpu.matmul %106, %107, %cst_33 {dimension_numbers = #tpu.dot_dimension_numbers<[1], [0], [0], [1], [0, 0, 1, 1], [], []>} : vector<8x128xbf16>, vector<128x128xbf16>, vector<8x128xf32> -> vector<8x128xf32>
    %c0_34 = arith.constant 0 : index
    %c0_35 = arith.constant 0 : index
    %109 = vector.load %arg12[%c0_34, %c0_35] : memref<1x128xf32, #tpu.memory_space<vmem>>, vector<1x128xf32>
    %110 = vector.broadcast %109 : vector<1x128xf32> to vector<8x128xf32>
    %111 = arith.addf %108, %110 : vector<8x128xf32>
    %cst_36 = arith.constant 0.176776692 : f32
    %112 = vector.broadcast %cst_36 : f32 to vector<8x128xf32>
    %113 = arith.mulf %111, %112 : vector<8x128xf32>
    %114 = arith.truncf %3 : vector<16x128xf32> to vector<16x128xbf16>
    %c0_37 = arith.constant 0 : index
    %c0_38 = arith.constant 0 : index
    %115 = vector.load %arg13[%c0_37, %c0_38] : memref<128x256xbf16, #tpu.memory_space<vmem>>, vector<128x256xbf16>
    %cst_39 = arith.constant dense<0.000000e+00> : vector<16x256xf32>
    %116 = tpu.matmul %114, %115, %cst_39 {dimension_numbers = #tpu.dot_dimension_numbers<[1], [0], [0], [1], [0, 0, 1, 1], [], []>} : vector<16x128xbf16>, vector<128x256xbf16>, vector<16x256xf32> -> vector<16x256xf32>
    %c0_40 = arith.constant 0 : index
    %c0_41 = arith.constant 0 : index
    %117 = vector.load %arg14[%c0_40, %c0_41] : memref<1x256xf32, #tpu.memory_space<vmem>>, vector<1x256xf32>
    %118 = vector.broadcast %117 : vector<1x256xf32> to vector<16x256xf32>
    %119 = arith.addf %116, %118 : vector<16x256xf32>
    %120 = vector.extract_strided_slice %119 {offsets = [0, 0], sizes = [16, 128], strides = [1, 1]} : vector<16x256xf32> to vector<16x128xf32>
    %121 = vector.extract_strided_slice %119 {offsets = [0, 128], sizes = [16, 128], strides = [1, 1]} : vector<16x256xf32> to vector<16x128xf32>
    %c0_42 = arith.constant 0 : index
    %c0_43 = arith.constant 0 : index
    %c0_44 = arith.constant 0 : index
    %122 = vector.load %arg4[%c0_42, %c0_43, %c0_44] : memref<1x1x16xf32, #tpu.memory_space<vmem>>, vector<1x1x16xf32>
    %123 = arith.truncf %113 : vector<8x128xf32> to vector<8x128xbf16>
    %124 = vector.extract_strided_slice %123 {offsets = [0, 0], sizes = [8, 32], strides = [1, 1]} : vector<8x128xbf16> to vector<8x32xbf16>
    %125 = vector.extract_strided_slice %123 {offsets = [0, 32], sizes = [8, 32], strides = [1, 1]} : vector<8x128xbf16> to vector<8x32xbf16>
    %126 = vector.extract_strided_slice %123 {offsets = [0, 64], sizes = [8, 32], strides = [1, 1]} : vector<8x128xbf16> to vector<8x32xbf16>
    %127 = vector.extract_strided_slice %123 {offsets = [0, 96], sizes = [8, 32], strides = [1, 1]} : vector<8x128xbf16> to vector<8x32xbf16>
    %128 = vector.shape_cast %124 : vector<8x32xbf16> to vector<1x8x32xbf16>
    %129 = vector.shape_cast %125 : vector<8x32xbf16> to vector<1x8x32xbf16>
    %130 = vector.shape_cast %126 : vector<8x32xbf16> to vector<1x8x32xbf16>
    %131 = vector.shape_cast %127 : vector<8x32xbf16> to vector<1x8x32xbf16>
    %132 = tpu.concatenate %128, %129, %130, %131 in 0 : vector<1x8x32xbf16>, vector<1x8x32xbf16>, vector<1x8x32xbf16>, vector<1x8x32xbf16> -> vector<4x8x32xbf16>
    %133 = arith.truncf %120 : vector<16x128xf32> to vector<16x128xbf16>
    %134 = vector.extract_strided_slice %133 {offsets = [0, 0], sizes = [16, 32], strides = [1, 1]} : vector<16x128xbf16> to vector<16x32xbf16>
    %135 = vector.extract_strided_slice %133 {offsets = [0, 32], sizes = [16, 32], strides = [1, 1]} : vector<16x128xbf16> to vector<16x32xbf16>
    %136 = vector.extract_strided_slice %133 {offsets = [0, 64], sizes = [16, 32], strides = [1, 1]} : vector<16x128xbf16> to vector<16x32xbf16>
    %137 = vector.extract_strided_slice %133 {offsets = [0, 96], sizes = [16, 32], strides = [1, 1]} : vector<16x128xbf16> to vector<16x32xbf16>
    %138 = vector.shape_cast %134 : vector<16x32xbf16> to vector<1x16x32xbf16>
    %139 = vector.shape_cast %135 : vector<16x32xbf16> to vector<1x16x32xbf16>
    %140 = vector.shape_cast %136 : vector<16x32xbf16> to vector<1x16x32xbf16>
    %141 = vector.shape_cast %137 : vector<16x32xbf16> to vector<1x16x32xbf16>
    %142 = tpu.concatenate %138, %139, %140, %141 in 0 : vector<1x16x32xbf16>, vector<1x16x32xbf16>, vector<1x16x32xbf16>, vector<1x16x32xbf16> -> vector<4x16x32xbf16>
    %143 = arith.truncf %121 : vector<16x128xf32> to vector<16x128xbf16>
    %144 = vector.extract_strided_slice %143 {offsets = [0, 0], sizes = [16, 32], strides = [1, 1]} : vector<16x128xbf16> to vector<16x32xbf16>
    %145 = vector.extract_strided_slice %143 {offsets = [0, 32], sizes = [16, 32], strides = [1, 1]} : vector<16x128xbf16> to vector<16x32xbf16>
    %146 = vector.extract_strided_slice %143 {offsets = [0, 64], sizes = [16, 32], strides = [1, 1]} : vector<16x128xbf16> to vector<16x32xbf16>
    %147 = vector.extract_strided_slice %143 {offsets = [0, 96], sizes = [16, 32], strides = [1, 1]} : vector<16x128xbf16> to vector<16x32xbf16>
    %148 = vector.shape_cast %144 : vector<16x32xbf16> to vector<1x16x32xbf16>
    %149 = vector.shape_cast %145 : vector<16x32xbf16> to vector<1x16x32xbf16>
    %150 = vector.shape_cast %146 : vector<16x32xbf16> to vector<1x16x32xbf16>
    %151 = vector.shape_cast %147 : vector<16x32xbf16> to vector<1x16x32xbf16>
    %152 = tpu.concatenate %148, %149, %150, %151 in 0 : vector<1x16x32xbf16>, vector<1x16x32xbf16>, vector<1x16x32xbf16>, vector<1x16x32xbf16> -> vector<4x16x32xbf16>
    "tpu.trace_start"() <{level = 10 : i32, message = "bqd,bkd->bqk"}> : () -> ()
    %cst_45 = arith.constant dense<0.000000e+00> : vector<4x8x16xf32>
    %153 = tpu.matmul %132, %142, %cst_45 {dimension_numbers = #tpu.dot_dimension_numbers<[2], [2], [1], [1], [0, 0, 0, 1, 1, 1], [0], [0]>} : vector<4x8x32xbf16>, vector<4x16x32xbf16>, vector<4x8x16xf32> -> vector<4x8x16xf32>
    "tpu.trace_stop"() : () -> ()
    %154 = vector.shape_cast %153 : vector<4x8x16xf32> to vector<4x1x8x16xf32>
    %155 = vector.shape_cast %122 : vector<1x1x16xf32> to vector<1x1x1x16xf32>
    %156 = vector.broadcast %155 : vector<1x1x1x16xf32> to vector<4x1x8x16xf32>
    %157 = arith.addf %154, %156 : vector<4x1x8x16xf32>
    %cst_46 = arith.constant dense<0xFF800000> : vector<4x1x8xf32>
    %158 = vector.multi_reduction <maximumf>, %157, %cst_46 [3] : vector<4x1x8x16xf32> to vector<4x1x8xf32>
    %159 = vector.shape_cast %158 : vector<4x1x8xf32> to vector<4x1x8x1xf32>
    %160 = vector.broadcast %159 : vector<4x1x8x1xf32> to vector<4x1x8x16xf32>
    %161 = arith.subf %157, %160 : vector<4x1x8x16xf32>
    %162 = math.exp %161 : vector<4x1x8x16xf32>
    %cst_47 = arith.constant dense<0.000000e+00> : vector<4x1x8xf32>
    %163 = vector.multi_reduction <add>, %162, %cst_47 [3] : vector<4x1x8x16xf32> to vector<4x1x8xf32>
    %164 = vector.shape_cast %163 : vector<4x1x8xf32> to vector<4x1x8x1xf32>
    %165 = tpu.reciprocal %164 {approx = true} : vector<4x1x8x1xf32> -> vector<4x1x8x1xf32>
    %166 = vector.broadcast %165 : vector<4x1x8x1xf32> to vector<4x1x8x16xf32>
    %167 = arith.mulf %162, %166 : vector<4x1x8x16xf32>
    %168 = vector.shape_cast %167 : vector<4x1x8x16xf32> to vector<4x8x16xf32>
    %169 = arith.truncf %168 : vector<4x8x16xf32> to vector<4x8x16xbf16>
    "tpu.trace_start"() <{level = 10 : i32, message = "bqk,bkd->bqd"}> : () -> ()
    %cst_48 = arith.constant dense<0.000000e+00> : vector<4x8x32xf32>
    %170 = tpu.matmul %169, %152, %cst_48 {dimension_numbers = #tpu.dot_dimension_numbers<[2], [1], [1], [2], [0, 0, 0, 1, 1, 2], [0], [0]>} : vector<4x8x16xbf16>, vector<4x16x32xbf16>, vector<4x8x32xf32> -> vector<4x8x32xf32>
    "tpu.trace_stop"() : () -> ()
    %171 = vector.extract_strided_slice %170 {offsets = [0, 0, 0], sizes = [1, 8, 32], strides = [1, 1, 1]} : vector<4x8x32xf32> to vector<1x8x32xf32>
    %172 = vector.shape_cast %171 : vector<1x8x32xf32> to vector<8x32xf32>
    %173 = vector.extract_strided_slice %170 {offsets = [1, 0, 0], sizes = [1, 8, 32], strides = [1, 1, 1]} : vector<4x8x32xf32> to vector<1x8x32xf32>
    %174 = vector.shape_cast %173 : vector<1x8x32xf32> to vector<8x32xf32>
    %175 = vector.extract_strided_slice %170 {offsets = [2, 0, 0], sizes = [1, 8, 32], strides = [1, 1, 1]} : vector<4x8x32xf32> to vector<1x8x32xf32>
    %176 = vector.shape_cast %175 : vector<1x8x32xf32> to vector<8x32xf32>
    %177 = vector.extract_strided_slice %170 {offsets = [3, 0, 0], sizes = [1, 8, 32], strides = [1, 1, 1]} : vector<4x8x32xf32> to vector<1x8x32xf32>
    %178 = vector.shape_cast %177 : vector<1x8x32xf32> to vector<8x32xf32>
    %179 = tpu.concatenate %172, %174, %176, %178 in 1 : vector<8x32xf32>, vector<8x32xf32>, vector<8x32xf32>, vector<8x32xf32> -> vector<8x128xf32>
    %180 = arith.truncf %179 : vector<8x128xf32> to vector<8x128xbf16>
    %c0_49 = arith.constant 0 : index
    %c0_50 = arith.constant 0 : index
    %181 = vector.load %arg15[%c0_49, %c0_50] : memref<128x128xbf16, #tpu.memory_space<vmem>>, vector<128x128xbf16>
    %cst_51 = arith.constant dense<0.000000e+00> : vector<8x128xf32>
    %182 = tpu.matmul %180, %181, %cst_51 {dimension_numbers = #tpu.dot_dimension_numbers<[1], [0], [0], [1], [0, 0, 1, 1], [], []>} : vector<8x128xbf16>, vector<128x128xbf16>, vector<8x128xf32> -> vector<8x128xf32>
    %c0_52 = arith.constant 0 : index
    %c0_53 = arith.constant 0 : index
    %183 = vector.load %arg16[%c0_52, %c0_53] : memref<1x128xf32, #tpu.memory_space<vmem>>, vector<1x128xf32>
    %184 = vector.broadcast %183 : vector<1x128xf32> to vector<8x128xf32>
    %185 = arith.addf %182, %184 : vector<8x128xf32>
    %186 = arith.addf %105, %185 : vector<8x128xf32>
    %c0_54 = arith.constant 0 : index
    %c0_55 = arith.constant 0 : index
    %187 = vector.load %arg17[%c0_54, %c0_55] : memref<1x128xf32, #tpu.memory_space<vmem>>, vector<1x128xf32>
    %c0_56 = arith.constant 0 : index
    %c0_57 = arith.constant 0 : index
    %188 = vector.load %arg18[%c0_56, %c0_57] : memref<1x128xf32, #tpu.memory_space<vmem>>, vector<1x128xf32>
    %cst_58 = arith.constant dense<0.000000e+00> : vector<8xf32>
    %189 = vector.multi_reduction <add>, %186, %cst_58 [1] : vector<8x128xf32> to vector<8xf32>
    %190 = vector.shape_cast %189 : vector<8xf32> to vector<8x1xf32>
    %cst_59 = arith.constant 1.280000e+02 : f32
    %191 = vector.broadcast %cst_59 : f32 to vector<8x1xf32>
    %192 = arith.divf %190, %191 : vector<8x1xf32>
    %193 = vector.broadcast %192 : vector<8x1xf32> to vector<8x128xf32>
    %194 = arith.subf %186, %193 : vector<8x128xf32>
    %195 = vector.broadcast %192 : vector<8x1xf32> to vector<8x128xf32>
    %196 = arith.subf %186, %195 : vector<8x128xf32>
    %197 = arith.mulf %194, %196 : vector<8x128xf32>
    %cst_60 = arith.constant dense<0.000000e+00> : vector<8xf32>
    %198 = vector.multi_reduction <add>, %197, %cst_60 [1] : vector<8x128xf32> to vector<8xf32>
    %199 = vector.shape_cast %198 : vector<8xf32> to vector<8x1xf32>
    %cst_61 = arith.constant 1.280000e+02 : f32
    %200 = vector.broadcast %cst_61 : f32 to vector<8x1xf32>
    %201 = arith.divf %199, %200 : vector<8x1xf32>
    %202 = vector.broadcast %192 : vector<8x1xf32> to vector<8x128xf32>
    %203 = arith.subf %186, %202 : vector<8x128xf32>
    %cst_62 = arith.constant 9.99999974E-6 : f32
    %204 = vector.broadcast %cst_62 : f32 to vector<8x1xf32>
    %205 = arith.addf %201, %204 : vector<8x1xf32>
    %206 = math.rsqrt %205 : vector<8x1xf32>
    %207 = vector.broadcast %206 : vector<8x1xf32> to vector<8x128xf32>
    %208 = arith.mulf %203, %207 : vector<8x128xf32>
    %209 = vector.broadcast %187 : vector<1x128xf32> to vector<8x128xf32>
    %210 = arith.mulf %208, %209 : vector<8x128xf32>
    %211 = vector.broadcast %188 : vector<1x128xf32> to vector<8x128xf32>
    %212 = arith.addf %210, %211 : vector<8x128xf32>
    %213 = arith.truncf %212 : vector<8x128xf32> to vector<8x128xbf16>
    %c0_63 = arith.constant 0 : index
    %c0_64 = arith.constant 0 : index
    %214 = vector.load %arg19[%c0_63, %c0_64] : memref<128x256xbf16, #tpu.memory_space<vmem>>, vector<128x256xbf16>
    %cst_65 = arith.constant dense<0.000000e+00> : vector<8x256xf32>
    %215 = tpu.matmul %213, %214, %cst_65 {dimension_numbers = #tpu.dot_dimension_numbers<[1], [0], [0], [1], [0, 0, 1, 1], [], []>} : vector<8x128xbf16>, vector<128x256xbf16>, vector<8x256xf32> -> vector<8x256xf32>
    %c0_66 = arith.constant 0 : index
    %c0_67 = arith.constant 0 : index
    %216 = vector.load %arg20[%c0_66, %c0_67] : memref<1x256xf32, #tpu.memory_space<vmem>>, vector<1x256xf32>
    %217 = vector.broadcast %216 : vector<1x256xf32> to vector<8x256xf32>
    %218 = arith.addf %215, %217 : vector<8x256xf32>
    %cst_68 = arith.constant 0.000000e+00 : f32
    %219 = vector.broadcast %cst_68 : f32 to vector<8x256xf32>
    %220 = arith.maximumf %218, %219 : vector<8x256xf32>
    %221 = arith.truncf %220 : vector<8x256xf32> to vector<8x256xbf16>
    %c0_69 = arith.constant 0 : index
    %c0_70 = arith.constant 0 : index
    %222 = vector.load %arg21[%c0_69, %c0_70] : memref<256x128xbf16, #tpu.memory_space<vmem>>, vector<256x128xbf16>
    %cst_71 = arith.constant dense<0.000000e+00> : vector<8x128xf32>
    %223 = tpu.matmul %221, %222, %cst_71 {dimension_numbers = #tpu.dot_dimension_numbers<[1], [0], [0], [1], [0, 0, 1, 1], [], []>} : vector<8x256xbf16>, vector<256x128xbf16>, vector<8x128xf32> -> vector<8x128xf32>
    %c0_72 = arith.constant 0 : index
    %c0_73 = arith.constant 0 : index
    %224 = vector.load %arg22[%c0_72, %c0_73] : memref<1x128xf32, #tpu.memory_space<vmem>>, vector<1x128xf32>
    %225 = vector.broadcast %224 : vector<1x128xf32> to vector<8x128xf32>
    %226 = arith.addf %223, %225 : vector<8x128xf32>
    %227 = arith.addf %212, %226 : vector<8x128xf32>
    %c0_74 = arith.constant 0 : index
    %c0_75 = arith.constant 0 : index
    %228 = vector.load %arg23[%c0_74, %c0_75] : memref<1x128xf32, #tpu.memory_space<vmem>>, vector<1x128xf32>
    %c0_76 = arith.constant 0 : index
    %c0_77 = arith.constant 0 : index
    %229 = vector.load %arg24[%c0_76, %c0_77] : memref<1x128xf32, #tpu.memory_space<vmem>>, vector<1x128xf32>
    %cst_78 = arith.constant dense<0.000000e+00> : vector<8xf32>
    %230 = vector.multi_reduction <add>, %227, %cst_78 [1] : vector<8x128xf32> to vector<8xf32>
    %231 = vector.shape_cast %230 : vector<8xf32> to vector<8x1xf32>
    %cst_79 = arith.constant 1.280000e+02 : f32
    %232 = vector.broadcast %cst_79 : f32 to vector<8x1xf32>
    %233 = arith.divf %231, %232 : vector<8x1xf32>
    %234 = vector.broadcast %233 : vector<8x1xf32> to vector<8x128xf32>
    %235 = arith.subf %227, %234 : vector<8x128xf32>
    %236 = vector.broadcast %233 : vector<8x1xf32> to vector<8x128xf32>
    %237 = arith.subf %227, %236 : vector<8x128xf32>
    %238 = arith.mulf %235, %237 : vector<8x128xf32>
    %cst_80 = arith.constant dense<0.000000e+00> : vector<8xf32>
    %239 = vector.multi_reduction <add>, %238, %cst_80 [1] : vector<8x128xf32> to vector<8xf32>
    %240 = vector.shape_cast %239 : vector<8xf32> to vector<8x1xf32>
    %cst_81 = arith.constant 1.280000e+02 : f32
    %241 = vector.broadcast %cst_81 : f32 to vector<8x1xf32>
    %242 = arith.divf %240, %241 : vector<8x1xf32>
    %243 = vector.broadcast %233 : vector<8x1xf32> to vector<8x128xf32>
    %244 = arith.subf %227, %243 : vector<8x128xf32>
    %cst_82 = arith.constant 9.99999974E-6 : f32
    %245 = vector.broadcast %cst_82 : f32 to vector<8x1xf32>
    %246 = arith.addf %242, %245 : vector<8x1xf32>
    %247 = math.rsqrt %246 : vector<8x1xf32>
    %248 = vector.broadcast %247 : vector<8x1xf32> to vector<8x128xf32>
    %249 = arith.mulf %244, %248 : vector<8x128xf32>
    %250 = vector.broadcast %228 : vector<1x128xf32> to vector<8x128xf32>
    %251 = arith.mulf %249, %250 : vector<8x128xf32>
    %252 = vector.broadcast %229 : vector<1x128xf32> to vector<8x128xf32>
    %253 = arith.addf %251, %252 : vector<8x128xf32>
    %254 = vector.shape_cast %253 : vector<8x128xf32> to vector<1x8x128xf32>
    %c0_83 = arith.constant 0 : index
    %c0_84 = arith.constant 0 : index
    %c0_85 = arith.constant 0 : index
    %255 = vector.load %arg25[%c0_83, %c0_84, %c0_85] : memref<1x8x128xf32, #tpu.memory_space<vmem>>, vector<1x8x128xf32>
    tpu.vector_store %arg25[%c0_83, %c0_84, %c0_85], %254 {strides = array<i32>} : memref<1x8x128xf32, #tpu.memory_space<vmem>>, vector<1x8x128xf32>,
    return
  }
  func.func @transform_0(%arg0: i32) -> (i32, i32, i32) {
    %c0_i32 = arith.constant 0 : i32
    %c0_i32_0 = arith.constant 0 : i32
    %c0_i32_1 = arith.constant 0 : i32
    return %arg0, %c0_i32, %c0_i32_0 : i32, i32, i32
  }
  func.func @transform_1(%arg0: i32) -> (i32, i32, i32) {
    %c0_i32 = arith.constant 0 : i32
    %c0_i32_0 = arith.constant 0 : i32
    %c0_i32_1 = arith.constant 0 : i32
    return %arg0, %c0_i32, %c0_i32_0 : i32, i32, i32
  }
  func.func @transform_2(%arg0: i32) -> (i32, i32, i32) {
    %c0_i32 = arith.constant 0 : i32
    %c0_i32_0 = arith.constant 0 : i32
    %c0_i32_1 = arith.constant 0 : i32
    return %arg0, %c0_i32, %c0_i32_0 : i32, i32, i32
  }
  func.func @transform_3(%arg0: i32) -> (i32, i32, i32) {
    %c0_i32 = arith.constant 0 : i32
    %c0_i32_0 = arith.constant 0 : i32
    %c0_i32_1 = arith.constant 0 : i32
    return %arg0, %c0_i32, %c0_i32_0 : i32, i32, i32
  }
  func.func @transform_4(%arg0: i32) -> (i32, i32) {
    %c0_i32 = arith.constant 0 : i32
    %c0_i32_0 = arith.constant 0 : i32
    %c0_i32_1 = arith.constant 0 : i32
    return %c0_i32, %c0_i32_0 : i32, i32
  }
  func.func @transform_5(%arg0: i32) -> (i32, i32) {
    %c0_i32 = arith.constant 0 : i32
    %c0_i32_0 = arith.constant 0 : i32
    %c0_i32_1 = arith.constant 0 : i32
    return %c0_i32, %c0_i32_0 : i32, i32
  }
  func.func @transform_6(%arg0: i32) -> (i32, i32) {
    %c0_i32 = arith.constant 0 : i32
    %c0_i32_0 = arith.constant 0 : i32
    %c0_i32_1 = arith.constant 0 : i32
    return %c0_i32, %c0_i32_0 : i32, i32
  }
  func.func @transform_7(%arg0: i32) -> (i32, i32) {
    %c0_i32 = arith.constant 0 : i32
    %c0_i32_0 = arith.constant 0 : i32
    %c0_i32_1 = arith.constant 0 : i32
    return %c0_i32, %c0_i32_0 : i32, i32
  }
  func.func @transform_8(%arg0: i32) -> (i32, i32) {
    %c0_i32 = arith.constant 0 : i32
    %c0_i32_0 = arith.constant 0 : i32
    %c0_i32_1 = arith.constant 0 : i32
    return %c0_i32, %c0_i32_0 : i32, i32
  }
  func.func @transform_9(%arg0: i32) -> (i32, i32) {
    %c0_i32 = arith.constant 0 : i32
    %c0_i32_0 = arith.constant 0 : i32
    %c0_i32_1 = arith.constant 0 : i32
    return %c0_i32, %c0_i32_0 : i32, i32
  }
  func.func @transform_10(%arg0: i32) -> (i32, i32) {
    %c0_i32 = arith.constant 0 : i32
    %c0_i32_0 = arith.constant 0 : i32
    %c0_i32_1 = arith.constant 0 : i32
    return %c0_i32, %c0_i32_0 : i32, i32
  }
  func.func @transform_11(%arg0: i32) -> (i32, i32) {
    %c0_i32 = arith.constant 0 : i32
    %c0_i32_0 = arith.constant 0 : i32
    %c0_i32_1 = arith.constant 0 : i32
    return %c0_i32, %c0_i32_0 : i32, i32
  }
  func.func @transform_12(%arg0: i32) -> (i32, i32) {
    %c0_i32 = arith.constant 0 : i32
    %c0_i32_0 = arith.constant 0 : i32
    %c0_i32_1 = arith.constant 0 : i32
    return %c0_i32, %c0_i32_0 : i32, i32
  }
  func.func @transform_13(%arg0: i32) -> (i32, i32) {
    %c0_i32 = arith.constant 0 : i32
    %c0_i32_0 = arith.constant 0 : i32
    %c0_i32_1 = arith.constant 0 : i32
    return %c0_i32, %c0_i32_0 : i32, i32
  }
  func.func @transform_14(%arg0: i32) -> (i32, i32) {
    %c0_i32 = arith.constant 0 : i32
    %c0_i32_0 = arith.constant 0 : i32
    %c0_i32_1 = arith.constant 0 : i32
    return %c0_i32, %c0_i32_0 : i32, i32
  }
  func.func @transform_15(%arg0: i32) -> (i32, i32) {
    %c0_i32 = arith.constant 0 : i32
    %c0_i32_0 = arith.constant 0 : i32
    %c0_i32_1 = arith.constant 0 : i32
    return %c0_i32, %c0_i32_0 : i32, i32
  }
  func.func @transform_16(%arg0: i32) -> (i32, i32) {
    %c0_i32 = arith.constant 0 : i32
    %c0_i32_0 = arith.constant 0 : i32
    %c0_i32_1 = arith.constant 0 : i32
    return %c0_i32, %c0_i32_0 : i32, i32
  }
  func.func @transform_17(%arg0: i32) -> (i32, i32) {
    %c0_i32 = arith.constant 0 : i32
    %c0_i32_0 = arith.constant 0 : i32
    %c0_i32_1 = arith.constant 0 : i32
    return %c0_i32, %c0_i32_0 : i32, i32
  }
  func.func @transform_18(%arg0: i32) -> (i32, i32) {
    %c0_i32 = arith.constant 0 : i32
    %c0_i32_0 = arith.constant 0 : i32
    %c0_i32_1 = arith.constant 0 : i32
    return %c0_i32, %c0_i32_0 : i32, i32
  }
  func.func @transform_19(%arg0: i32) -> (i32, i32) {
    %c0_i32 = arith.constant 0 : i32
    %c0_i32_0 = arith.constant 0 : i32
    %c0_i32_1 = arith.constant 0 : i32
    return %c0_i32, %c0_i32_0 : i32, i32
  }
  func.func @transform_20(%arg0: i32) -> (i32, i32) {
    %c0_i32 = arith.constant 0 : i32
    %c0_i32_0 = arith.constant 0 : i32
    %c0_i32_1 = arith.constant 0 : i32
    return %c0_i32, %c0_i32_0 : i32, i32
  }
  func.func @transform_21(%arg0: i32) -> (i32, i32) {
    %c0_i32 = arith.constant 0 : i32
    %c0_i32_0 = arith.constant 0 : i32
    %c0_i32_1 = arith.constant 0 : i32
    return %c0_i32, %c0_i32_0 : i32, i32
  }
  func.func @transform_22(%arg0: i32) -> (i32, i32) {
    %c0_i32 = arith.constant 0 : i32
    %c0_i32_0 = arith.constant 0 : i32
    %c0_i32_1 = arith.constant 0 : i32
    return %c0_i32, %c0_i32_0 : i32, i32
  }
  func.func @transform_23(%arg0: i32) -> (i32, i32) {
    %c0_i32 = arith.constant 0 : i32
    %c0_i32_0 = arith.constant 0 : i32
    %c0_i32_1 = arith.constant 0 : i32
    return %c0_i32, %c0_i32_0 : i32, i32
  }
  func.func @transform_24(%arg0: i32) -> (i32, i32, i32) {
    %c0_i32 = arith.constant 0 : i32
    %c0_i32_0 = arith.constant 0 : i32
    %c0_i32_1 = arith.constant 0 : i32
    return %arg0, %c0_i32, %c0_i32_0 : i32, i32, i32
  }
}

</mosaic_0001>

<bundles_post_ra>
// kernel: tpu_custom_call.1
= control target key start
LH: loop header
LB: loop body
LE: loop exit
PB: predicated region body
PF: predicated region fallthrough
CT: control target
= control target key end

     0   :  { %s5031_s0 = inlined_call_operand.hbm [shape: f32[2,8,128], index: 0, kind: input, shape index: {}]   ;;  %s5032_s1 = inlined_call_operand.hbm [shape: f32[2,16,128], index: 1, kind: input, shape index: {}]   ;;  %s5033_s2 = inlined_call_operand.hbm [shape: f32[2,8,8], index: 2, kind: input, shape index: {}]   ;;  %s5034_s3 = inlined_call_operand.vmem [shape: f32[2,1,16], index: 3, kind: input, shape index: {}]   ;;  %s5035_s4 = inlined_call_operand.hbm [shape: bf16[128,384], index: 4, kind: input, shape index: {}]   ;;  %s5036_s5 = inlined_call_operand.vmem [shape: f32[1,384], index: 5, kind: input, shape index: {}]   ;;  %s5037_s6 = inlined_call_operand.hbm [shape: bf16[128,128], index: 6, kind: input, shape index: {}]   ;;  %s5038_s7 = inlined_call_operand.vmem [shape: f32[1,128], index: 7, kind: input, shape index: {}]   ;;  %s5039_s8 = inlined_call_operand.vmem [shape: f32[1,128], index: 8, kind: input, shape index: {}]   ;;  %s5040_s9 = inlined_call_operand.vmem [shape: f32[1,128], index: 9, kind: input, shape index: {}]   ;;  %s5041_s10 = inlined_call_operand.hbm [shape: bf16[128,128], index: 10, kind: input, shape index: {}]   ;;  %s5042_s11 = inlined_call_operand.vmem [shape: f32[1,128], index: 11, kind: input, shape index: {}]   ;;  %s5043_s12 = inlined_call_operand.hbm [shape: bf16[128,256], index: 12, kind: input, shape index: {}]   ;;  %s5044_s13 = inlined_call_operand.vmem [shape: f32[1,256], index: 13, kind: input, shape index: {}]   ;;  %s5045_s14 = inlined_call_operand.hbm [shape: bf16[128,128], index: 14, kind: input, shape index: {}]   ;;  %s5046_s15 = inlined_call_operand.vmem [shape: f32[1,128], index: 15, kind: input, shape index: {}]   ;;  %s5047_s16 = inlined_call_operand.vmem [shape: f32[1,128], index: 16, kind: input, shape index: {}]   ;;  %s5048_s17 = inlined_call_operand.vmem [shape: f32[1,128], index: 17, kind: input, shape index: {}]   ;;  %s5049_s18 = inlined_call_operand.hbm [shape: bf16[128,256], index: 18, kind: input, shape index: {}]   ;;  %s5050_s19 = inlined_call_operand.vmem [shape: f32[1,256], index: 19, kind: input, shape index: {}]   ;;  %s5051_s20 = inlined_call_operand.hbm [shape: bf16[256,128], index: 20, kind: input, shape index: {}]   ;;  %s5052_s21 = inlined_call_operand.vmem [shape: f32[1,128], index: 21, kind: input, shape index: {}]   ;;  %s5053_s22 = inlined_call_operand.vmem [shape: f32[1,128], index: 22, kind: input, shape index: {}]   ;;  %s5054_s23 = inlined_call_operand.vmem [shape: f32[1,128], index: 23, kind: input, shape index: {}]   ;;  %s5055_s24 = inlined_call_operand.hbm [shape: f32[2,8,128], index: 24, kind: output, shape index: {}]  }
   0x1   :  { %5080 = sst [smem:[#allocation33_spill]] %s5031_s0 }
   0x2   :  { %5081 = sst [smem:[#allocation34_spill]] %s5032_s1 }
   0x3   :  { %5082 = sst [smem:[#allocation35_spill]] %s5033_s2 }
   0x4   :  { %5083 = sst [smem:[#allocation36_spill]] %s5034_s3 }
   0x5   :  { %5084 = sst [smem:[#allocation37_spill]] %s5035_s4 }
   0x6   :  { %5085 = sst [smem:[#allocation38_spill]] %s5036_s5 }
   0x7   :  { %5086 = sst [smem:[#allocation39_spill]] %s5037_s6 }
   0x8   :  { %5087 = sst [smem:[#allocation40_spill]] %s5038_s7 }
   0x9   :  { %5088 = sst [smem:[#allocation41_spill]] %s5039_s8 }
   0xa   :  { %5089 = sst [smem:[#allocation42_spill]] %s5041_s10 }
   0xb   :  { %5090 = sst [smem:[#allocation43_spill]] %s5043_s12 }
   0xc   :  { %5091 = sst [smem:[#allocation44_spill]] %s5045_s14 }
   0xd   :  { %5092 = sst [smem:[#allocation45_spill]] %s5047_s16 }
   0xe   :  { %5093 = sst [smem:[#allocation46_spill]] %s5048_s17 }
   0xf   :  { %5094 = sst [smem:[#allocation47_spill]] %s5049_s18 }
  0x10   :  { %5095 = sst [smem:[#allocation48_spill]] %s5050_s19 }
  0x11   :  { %5096 = sst [smem:[#allocation49_spill]] %s5052_s21 }
  0x12   :  { %5097 = sst [smem:[#allocation50_spill]] %s5053_s22 }
  0x13   :  { %5098 = sst [smem:[#allocation51_spill]] %s5054_s23 }
  0x14   :  { %5099 = sst [smem:[#allocation52_spill]] %s5055_s24 }
  0x15   :  { %29 = vsyncpa [#allocation3], 0 }
  0x16   :  { %31 = vsyncpa [#allocation3 + $0x1], 0 }
  0x17   :  { %32 = vsyncpa [#allocation6], 0 }
  0x18   :  { %34 = vsyncpa [#allocation6 + $0x1], 0 }
  0x19   :  { %35 = vsyncpa [#allocation9], 0 }
  0x1a   :  { %36 = vsyncpa [#allocation12], 0 }
  0x1b   :  { %37 = vsyncpa [#allocation15], 0 }
  0x1c   :  { %38 = vsyncpa [#allocation18], 0 }
  0x1d   :  { %39 = vsyncpa [#allocation4], 0 }
  0x1e   :  { %41 = vsyncpa [#allocation4 + $0x1], 0  ;;  %s4457_s5 = smov 0   ;;  %s4459_s26 = smov 0  }
  0x1f   :  { %s4461_s27 = smov 0   ;;  %s4463_s28 = smov 0  }
  0x20 LB: > { %5100 = sst [smem:[#allocation27_spill]] %s4295_s5  ;;  %s4309_s6 = smov [#allocation8]   ;;  %s4307_s28 = sphi %s4463_s28, %s5154_s28   ;;  %s4303_s27 = sphi %s4461_s27, %s5156_s27   ;;  %s4299_s26 = sphi %s4459_s26, %s5158_s26   ;;  %s4295_s5 = sphi %s4457_s5, %s5157_s5  }
  0x21   : > { %5101 = sst [smem:[#allocation28_spill]] %s4303_s27  ;;  %s614_s2 = sshll.u32 %s4309_s6, 4  ;;  %s615_s2 = int_to_ptr.vmem [resolvable:$true] %s614_s2 }
  0x22   : > { %s4478_s29 = sadd.s32 4294967295, %s4307_s28   ;;  %p3238_p0 = scmp.ge.s32.totalorder %s4307_s28, 1 }
  0x23   : > { %p5072_p1 = scmp.eq.s32.totalorder %s4478_s29, 0  ;;  %p602_p2 = scmp.lt.s32.totalorder %s4307_s28, 3 }
  0x24   : > { %s4310_s30 = smov [#allocation11]   ;;  %s4311_s25 = smov [#allocation14]  }
  0x25   : > { %p4483_p3 = pnand %p3238_p0, %p602_p2  ;;  %s652_s3 = sshll.u32 %s4310_s30, 4  ;;  %s4496_s3 = int_to_ptr.vmem [resolvable:$true] %s652_s3 }
  0x26   : > { %s4498_s8 = sshll.u32 %s4311_s25, 4  ;;  %s3968_s1 = scalar_lea.vmem %s615_s2, 3072  ;;  %s685_s8 = int_to_ptr.vmem [resolvable:$true] %s4498_s8 }
  0x27   : > { %s5102_s0 = scalar_select %p4483_p3, 1, 0 }
  0x28   : > { %p3696_p5 = pneg %p4483_p3  ;;  %p3969_p8 = scmp.ne.s32.totalorder %s615_s2, %s3968_s1 }
  0x29   : > { %p3976_p11 = scmp.lt.s32.totalorder %s615_s2, %s615_s2  ;;  %p3977_p12 = scmp.lt.s32.totalorder %s3968_s1, %s3968_s1 }
  0x2a   : > { %p4492_p6 = pnand %p3696_p5, %p5072_p1 }
  0x2b   : > { %p3978_p13 = por %p3977_p12, %p3976_p11 }
  0x2c   : > { %s5103_s7 = scalar_select %p4492_p6, 1, 0 }
  0x2d   : > { %p4502_p7 = pneg %p4492_p6 }
  0x2f   : > { %s5104_s4 = scalar_select %p4502_p7, 1, 0 }
  0x30   : > { %p3971_p9 = pnand %p3969_p8, %p4502_p7 }
  0x32   : > { %p3972_p10 = pneg %p3971_p9 }
  0x34   : > { %p3979_p0 = pnand %p3978_p13, %p3972_p10 }
  0x36   : > { %3982 = shalt.err (!%p3979_p0)
}
  0x37   : > { %s4312_s6 = smov 192   ;;  %s4313_s30 = smov 12  }
  0x38   : > { %s5105_s23 = sld [smem:[#allocation37_spill]]  ;;  %s3994_s22 = scalar_lea.vmem %s4496_s3, 1024 }
  0x39   : > { %p3995_p2 = scmp.ne.s32.totalorder %s4496_s3, %s3994_s22  ;;  %p4002_p9 = scmp.lt.s32.totalorder %s4496_s3, %s4496_s3 }
  0x3a   : > { %p4003_p10 = scmp.lt.s32.totalorder %s3994_s22, %s3994_s22 }
  0x3b   : > { %p3997_p5 = pnand %p3995_p2, %p4502_p7 }
  0x3c   : > { %p4004_p11 = por %p4003_p10, %p4002_p9 }
  0x3d   : > { %p3998_p8 = pneg %p3997_p5 }
  0x3e   : > { %3699 = dma.hbm_to_vmem [thread:$0]  (!%p4492_p6), %s5105_s23, 3072, %s615_s2, [#allocation9], %s4312_s6, %s4312_s6, %s4313_s30  }
  0x3f   : > { %p4005_p12 = pnand %p4004_p11, %p3998_p8 }
  0x41   : > { %4008 = shalt.err (!%p4005_p12)
}
  0x42   : > { %s5061_s1 = smov 64   ;;  %s5063_s21 = smov 4  }
  0x43   : > { %s5106_s10 = sld [smem:[#allocation42_spill]]  ;;  %s4020_s2 = scalar_lea.vmem %s685_s8, 1024 }
  0x44   : > { %p4021_p13 = scmp.ne.s32.totalorder %s685_s8, %s4020_s2  ;;  %p4028_p5 = scmp.lt.s32.totalorder %s685_s8, %s685_s8 }
  0x45   : > { %p4029_p8 = scmp.lt.s32.totalorder %s4020_s2, %s4020_s2 }
  0x46   : > { %p4023_p0 = pnand %p4021_p13, %p4502_p7 }
  0x47   : > { %p4030_p9 = por %p4029_p8, %p4028_p5 }
  0x48   : > { %p4024_p2 = pneg %p4023_p0 }
  0x49   : > { %3705 = dma.hbm_to_vmem [thread:$0]  (!%p4492_p6), %s5106_s10, 1024, %s4496_s3, [#allocation12], %s5061_s1, %s5061_s1, %s5063_s21  }
  0x4a   : > { %p4031_p10 = pnand %p4030_p9, %p4024_p2 }
  0x4c   : > { %4034 = shalt.err (!%p4031_p10)
}
  0x4d   : > { %s5107_s14 = sld [smem:[#allocation44_spill]]  ;;  %s3237_s3 = sadd.s32 4294967294, %s4307_s28  }
  0x4e   : > { %s4541_s30 = sadd.s32 1, %s4307_s28   ;;  %s54_s25 = sadd.s32 1, %s4303_s27 }
  0x4f   : > { %5108 = sst [smem:[#allocation29_spill]] %s4541_s30  ;;  %s51_s23 = ssub.s32 %s4307_s28, %s4541_s30 }
  0x50   : > { %p61_p11 = scmp.ne.s32.totalorder %s4303_s27, %s4299_s26  ;;  %p52_p12 = scmp.eq.s32.totalorder %s51_s23, 0 }
  0x51   : > { %p62_p13 = scmp.eq.s32.totalorder %s4307_s28, 0  ;;  %p67_p0 = scmp.ne.s32.totalorder %s4299_s26, %s4295_s5 }
  0x52   : > { %p589_p2 = scmp.eq.s32.totalorder %s4478_s29, 1  ;;  %p595_p10 = scmp.eq.s32.totalorder %s3237_s3, 1 }
  0x53   : > { %3711 = dma.hbm_to_vmem [thread:$0]  (!%p4492_p6), %s5107_s14, 1024, %s685_s8, [#allocation15], %s5061_s1, %s5061_s1, %s5063_s21  }
  0x54   : > { %s4553_s24 = scalar_select %p52_p12, %s4303_s27, %s54_s25  }
  0x55   : > { %p63_p5 = por %p62_p13, %p61_p11  ;;  %p4557_p8 = por %p5072_p1, %p67_p0 }
  0x56   : > { %5109 = sst [smem:[#allocation30_spill]] %s4553_s24  ;;  %p4561_p9 = por %p589_p2, %p61_p11 }
  0x57   : > { %s5110_s8 = scalar_select %p4557_p8, 1, 0 }
  0x58   : > { %s5111_s2 = scalar_select %p4561_p9, 1, 0 }
  0x59   : > { %p4565_p4 = por %p595_p10, %p67_p0  ;;  %p3739_p3 = scmp.lt.s32.totalorder %s4307_s28, 2 }
  0x5a   : > { %5112 = sst [smem:[#allocation31_spill]] %s5111_s2  ;;  %s4571_s6 = sand.u32 1, %s4303_s27  }
  0x5b   : > { %s5113_s22 = scalar_select %p4565_p4, 1, 0 }
  0x5c   : > { %s763_s25 = sand.u32 1, %s4307_s28   ;;  %p4574_p12 = pnand %p3739_p3, %p63_p5 }
  0x5d   : > { %5114 = sst [smem:[#allocation32_spill]] %s5113_s22  ;;  %s3249_s1 = sshll.u32 %s4571_s6, 4 }
  0x5e   : > { %s3393_s21 = sshll.u32 %s4307_s28, 8  ;;  %s5116_s24 = sld [smem:[#allocation34_spill]] }
  0x5f   : > { %s767_s30 = scalar_lea.vmem [#allocation5], %s3249_s1  ;;  %s4587_s22 = scalar_lea.sflag [#allocation6], %s763_s25 }
  0x60   : > { %s774_s27 = sshll.u32 %s767_s30, 4  ;;  %p4593_p11 = pneg %p4574_p12  ;;  %s4585_s27 = int_to_ptr.vmem [resolvable:$true] %s774_s27 }
  0x64   : > { %s4583_s3 = scalar_lea.hbm %s5116_s24, %s3393_s21  ;;  %s4040_s21 = scalar_lea.hbm %s5116_s24, 512 }
  0x65   : > { %s4035_s5 = scalar_lea.hbm %s4583_s3, 256  ;;  %p4041_p2 = scmp.lt.s32.totalorder %s4583_s3, %s5116_s24 }
  0x66   : > { %p4036_p3 = scmp.ne.s32.totalorder %s4583_s3, %s4035_s5  ;;  %p4042_p5 = scmp.lt.s32.totalorder %s4040_s21, %s4035_s5 }
  0x68   : > { %p4038_p13 = pnand %p4593_p11, %p4036_p3  ;;  %p4043_p10 = por %p4042_p5, %p4041_p2 }
  0x6a   : > { %p4039_p0 = pneg %p4038_p13 }
  0x6c   : > { %p4044_p1 = pnand %p4043_p10, %p4039_p0 }
  0x6e   : > { %4047 = shalt.err (!%p4044_p1)
}
  0x6f   : > { %s4048_s25 = scalar_lea.vmem %s4585_s27, 256  ;;  %s4316_s19 = smov [#allocation5]  }
  0x70   : > { %p4049_p4 = scmp.ne.s32.totalorder %s4585_s27, %s4048_s25  ;;  %s4053_s10 = sshll.u32 %s4316_s19, 4  ;;  %s4054_s10 = int_to_ptr.vmem [resolvable:$false] %s4053_s10 }
  0x71   : > { %s4055_s14 = scalar_lea.vmem %s4054_s10, 512  ;;  %p4056_p9 = scmp.lt.s32.totalorder %s4585_s27, %s4054_s10 }
  0x72   : > { %p4051_p3 = pnand %p4049_p4, %p4593_p11  ;;  %p4057_p8 = scmp.lt.s32.totalorder %s4055_s14, %s4048_s25 }
  0x74   : > { %p4052_p13 = pneg %p4051_p3  ;;  %p4058_p6 = por %p4057_p8, %p4056_p9 }
  0x76   : > { %p4059_p7 = pnand %p4058_p6, %p4052_p13 }
  0x78   : > { %4062 = shalt.err (!%p4059_p7)
}
  0x79   : > { %s4317_s5 = smov 128   ;;  %s4318_s21 = smov 8  }
  0x7a   : > { %3724 = dma.hbm_to_vmem [thread:$0]  (!%p4574_p12), %s4583_s3, 256, %s4585_s27, %s4587_s22, %s4317_s5, %s4317_s5, %s4318_s21  }
  0x7b   : > { %s4319_s19 = smov [#allocation10]   ;;  %s4320_s30 = smov [#allocation13]  }
  0x7c   : > { %s630_s1 = sshll.u32 %s4319_s19, 4  ;;  %s668_s25 = sshll.u32 %s4320_s30, 4  ;;  %s631_s1 = int_to_ptr.vmem [resolvable:$true] %s630_s1  ;;  %s669_s25 = int_to_ptr.vmem [resolvable:$true] %s668_s25 }
  0x7d   : > { %s4074_s10 = scalar_lea.vmem %s631_s1, 1024  ;;  %p5118_p4 = scmp.ne.s32.totalorder %s5104_s4, 0 }
  0x7e   : > { %p4075_p1 = scmp.ne.s32.totalorder %s631_s1, %s4074_s10  ;;  %p4082_p8 = scmp.lt.s32.totalorder %s631_s1, %s631_s1 }
  0x7f   : > { %p4083_p9 = scmp.lt.s32.totalorder %s4074_s10, %s4074_s10 }
  0x80   : > { %p4077_p6 = pnand %p4075_p1, %p5118_p4 }
  0x81   : > { %p4084_p0 = por %p4083_p9, %p4082_p8 }
  0x82   : > { %p4078_p7 = pneg %p4077_p6 }
  0x84   : > { %p4085_p2 = pnand %p4084_p0, %p4078_p7 }
  0x86   : > { %4088 = shalt.err (!%p4085_p2)
}
  0x87   : > { %p5119_p5 = scmp.ne.s32.totalorder %s5103_s7, 0  ;;  %s5120_s14 = smov 4  }
  0x88   : > { %s5121_s24 = smov 64   ;;  %s5122_s19 = sld [smem:[#allocation39_spill]] }
  0x89   : > { %s4100_s30 = scalar_lea.vmem %s669_s25, 2048  ;;  %p4108_p1 = scmp.lt.s32.totalorder %s669_s25, %s669_s25 }
  0x8a   : > { %p4101_p10 = scmp.ne.s32.totalorder %s669_s25, %s4100_s30  ;;  %p4109_p6 = scmp.lt.s32.totalorder %s4100_s30, %s4100_s30 }
  0x8c   : > { %p4103_p3 = pnand %p4101_p10, %p5118_p4  ;;  %p4110_p7 = por %p4109_p6, %p4108_p1 }
  0x8e   : > { %3702 = dma.hbm_to_vmem [thread:$0]  (!%p5119_p5), %s5122_s19, 1024, %s631_s1, [#allocation9], %s5121_s24, %s5121_s24, %s5120_s14  }
  0x8f   : > { %p4104_p13 = pneg %p4103_p3 }
  0x91   : > { %p4111_p8 = pnand %p4110_p7, %p4104_p13 }
  0x93   : > { %4114 = shalt.err (!%p4111_p8)
}
  0x94   : > { %s5123_s12 = sld [smem:[#allocation43_spill]]  ;;  %s4321_s1 = smov [#allocation16]  }
  0x95   : > { %s706_s3 = sshll.u32 %s4321_s1, 4  ;;  %s4322_s19 = smov [#allocation17]   ;;  %s707_s3 = int_to_ptr.vmem [resolvable:$true] %s706_s3 }
  0x96   : > { %s722_s17 = sshll.u32 %s4322_s19, 4  ;;  %s4126_s16 = scalar_lea.vmem %s707_s3, 2048  ;;  %s723_s17 = int_to_ptr.vmem [resolvable:$true] %s722_s17 }
  0x97   : > { %p4127_p9 = scmp.ne.s32.totalorder %s707_s3, %s4126_s16  ;;  %p4134_p10 = scmp.lt.s32.totalorder %s707_s3, %s707_s3 }
  0x98   : > { %p4135_p3 = scmp.lt.s32.totalorder %s4126_s16, %s4126_s16 }
  0x99   : > { %p4129_p0 = pnand %p4127_p9, %p5118_p4 }
  0x9a   : > { %3708 = dma.hbm_to_vmem [thread:$0]  (!%p5119_p5), %s5123_s12, 2048, %s669_s25, [#allocation12], %s4317_s5, %s4317_s5, %s4318_s21  }
  0x9b   : > { %p4130_p2 = pneg %p4129_p0  ;;  %p4136_p13 = por %p4135_p3, %p4134_p10 }
  0x9d   : > { %p4137_p1 = pnand %p4136_p13, %p4130_p2 }
  0x9f   : > { %4140 = shalt.err (!%p4137_p1)
}
  0xa0   : > { %s5124_s18 = sld [smem:[#allocation47_spill]]  ;;  %s4152_s10 = scalar_lea.vmem %s723_s17, 2048 }
  0xa1   : > { %p4153_p6 = scmp.ne.s32.totalorder %s723_s17, %s4152_s10  ;;  %p4160_p9 = scmp.lt.s32.totalorder %s723_s17, %s723_s17 }
  0xa2   : > { %p4161_p0 = scmp.lt.s32.totalorder %s4152_s10, %s4152_s10 }
  0xa3   : > { %p4155_p7 = pnand %p4153_p6, %p5118_p4 }
  0xa4   : > { %p4162_p2 = por %p4161_p0, %p4160_p9 }
  0xa5   : > { %p4156_p8 = pneg %p4155_p7 }
  0xa6   : > { %3714 = dma.hbm_to_vmem [thread:$0]  (!%p5119_p5), %s5124_s18, 2048, %s707_s3, [#allocation15], %s4317_s5, %s4317_s5, %s4318_s21  }
  0xa7   : > { %p4163_p10 = pnand %p4162_p2, %p4156_p8 }
  0xa9   : > { %4166 = shalt.err (!%p4163_p10)
}
  0xaa   : > { %3717 = dma.hbm_to_vmem [thread:$0]  (!%p5119_p5), %s5051_s20, 2048, %s723_s17, [#allocation18], %s5121_s24, %s5121_s24, %s5120_s14  }
  0xab   : > { %s3247_s4 = sshll.u32 %s4571_s6, 3  ;;  %s3248_s5 = sshll.u32 %s4307_s28, 7 }
  0xac   : > { %s5125_s3 = sld [smem:[#allocation33_spill]]  ;;  %s749_s7 = scalar_lea.vmem [#allocation2], %s3247_s4 }
  0xad   : > { %s756_s25 = sshll.u32 %s749_s7, 4  ;;  %s5126_s16 = sld [smem:[#allocation35_spill]]  ;;  %s757_s25 = int_to_ptr.vmem [resolvable:$true] %s756_s25 }
  0xae   : > { %s746_s17 = scalar_lea.sflag [#allocation3], %s4571_s6 }
  0xb2   : > { %s4664_s19 = scalar_lea.hbm %s5125_s3, %s3248_s5  ;;  %s4172_s1 = scalar_lea.hbm %s5125_s3, 256 }
  0xb3   : > { %s4671_s27 = scalar_lea.hbm %s5126_s16, %s3248_s5  ;;  %s4167_s24 = scalar_lea.hbm %s4664_s19, 128 }
  0xb4   : > { %p4168_p4 = scmp.ne.s32.totalorder %s4664_s19, %s4167_s24  ;;  %p4173_p13 = scmp.lt.s32.totalorder %s4664_s19, %s5125_s3 }
  0xb5   : > { %p4174_p1 = scmp.lt.s32.totalorder %s4172_s1, %s4167_s24 }
  0xb6   : > { %p4170_p5 = pnand %p4168_p4, %p4593_p11 }
  0xb7   : > { %p4175_p6 = por %p4174_p1, %p4173_p13 }
  0xb8   : > { %p4171_p3 = pneg %p4170_p5 }
  0xba   : > { %p4176_p7 = pnand %p4175_p6, %p4171_p3 }
  0xbc   : > { %4179 = shalt.err (!%p4176_p7)
}
  0xbd   : > { %s4180_s5 = scalar_lea.vmem %s757_s25, 128  ;;  %s4323_s7 = smov [#allocation2]  }
  0xbe   : > { %p4181_p8 = scmp.ne.s32.totalorder %s757_s25, %s4180_s5  ;;  %s4185_s30 = sshll.u32 %s4323_s7, 4  ;;  %s4186_s30 = int_to_ptr.vmem [resolvable:$false] %s4185_s30 }
  0xbf   : > { %s4187_s10 = scalar_lea.vmem %s4186_s30, 256  ;;  %p4188_p2 = scmp.lt.s32.totalorder %s757_s25, %s4186_s30 }
  0xc0   : > { %p4183_p9 = pnand %p4181_p8, %p4593_p11  ;;  %p4189_p10 = scmp.lt.s32.totalorder %s4187_s10, %s4180_s5 }
  0xc2   : > { %p4184_p0 = pneg %p4183_p9  ;;  %p4190_p4 = por %p4189_p10, %p4188_p2 }
  0xc4   : > { %p4191_p5 = pnand %p4190_p4, %p4184_p0 }
  0xc6   : > { %4194 = shalt.err (!%p4191_p5)
}
  0xc7   : > { %3721 = dma.hbm_to_vmem [thread:$0]  (!%p4574_p12), %s4664_s19, 128, %s757_s25, %s746_s17  }
  0xc8   : > { %s788_s12 = scalar_lea.vmem [#allocation7], %s3247_s4  ;;  %s4195_s24 = scalar_lea.hbm %s4671_s27, 128 }
  0xc9   : > { %s795_s18 = sshll.u32 %s788_s12, 4  ;;  %p4196_p3 = scmp.ne.s32.totalorder %s4671_s27, %s4195_s24  ;;  %s796_s18 = int_to_ptr.vmem [resolvable:$true] %s795_s18 }
  0xca   : > { %s4200_s1 = scalar_lea.hbm %s5126_s16, 256  ;;  %p4201_p6 = scmp.lt.s32.totalorder %s4671_s27, %s5126_s16 }
  0xcb   : > { %p4198_p13 = pnand %p4196_p3, %p4593_p11  ;;  %p4202_p7 = scmp.lt.s32.totalorder %s4200_s1, %s4195_s24 }
  0xcd   : > { %p4199_p1 = pneg %p4198_p13  ;;  %p4203_p8 = por %p4202_p7, %p4201_p6 }
  0xcf   : > { %p4204_p9 = pnand %p4203_p8, %p4199_p1 }
  0xd1   : > { %4207 = shalt.err (!%p4204_p9)
}
  0xd2   : > { %s4208_s6 = scalar_lea.vmem %s796_s18, 128  ;;  %s4324_s4 = smov [#allocation7]  }
  0xd3   : > { %p4209_p0 = scmp.ne.s32.totalorder %s796_s18, %s4208_s6  ;;  %s4213_s19 = sshll.u32 %s4324_s4, 4  ;;  %s4214_s19 = int_to_ptr.vmem [resolvable:$false] %s4213_s19 }
  0xd4   : > { %s4215_s25 = scalar_lea.vmem %s4214_s19, 256  ;;  %p4216_p4 = scmp.lt.s32.totalorder %s796_s18, %s4214_s19 }
  0xd5   : > { %p4211_p2 = pnand %p4209_p0, %p4593_p11  ;;  %p4217_p5 = scmp.lt.s32.totalorder %s4215_s25, %s4208_s6 }
  0xd7   : > { %p4212_p10 = pneg %p4211_p2  ;;  %p4218_p3 = por %p4217_p5, %p4216_p4 }
  0xd9   : > { %p4219_p13 = pnand %p4218_p3, %p4212_p10 }
  0xdb   : > { %4222 = shalt.err (!%p4219_p13)
}
  0xdc   : > { %3727 = dma.hbm_to_vmem [thread:$0]  (!%p4574_p12), %s4671_s27, 128, %s796_s18, %s4587_s22  }
  0xdd   : > { %p5127_p1 = scmp.ne.s32.totalorder %s5102_s0, 0 }
  0xde   : > { %s4712_s2 = sand.u32 (!%p5127_p1), 1, %s4299_s26   ;;  %p5128_p11 = scmp.ne.s32.totalorder (!%p5127_p1), %s5110_s8, 0 }
  0xdf   : > { %810 = sbr.rel (%p5127_p1) target bundleno = 4319 (0x10df), region = 116  ;;  %s4715_s17 = sshll.u32 (!%p5127_p1), %s4712_s2, 3 }
  0xe0   : > { %s813_s30 = scalar_lea.sflag (!%p5127_p1), [#allocation3], %s4712_s2  ;;  %s816_s10 = scalar_lea.vmem (!%p5127_p1), [#allocation2], %s4715_s17 }
  0xe4   : > { %4266 = dma.done.wait (%p5128_p11), %s813_s30, 128  }
  0xe5   : > { %4268 = vsyncadd (%p5128_p11), %s813_s30, 4294967168  ;;  %s821_s0 = sand.u32 1, %s4478_s29   ;;  %s3256_s22 = sshll.u32 %s4712_s2, 4 }
  0xe6   : > { %s822_s23 = scalar_lea.sflag [#allocation6], %s821_s0  ;;  %s4725_s27 = scalar_lea.vmem [#allocation5], %s3256_s22 }
  0xe7   : > { %4270 = dma.done.wait (%p5128_p11), %s822_s23, 384  }
  0xe8   : > { %4272 = vsyncadd (%p5128_p11), %s822_s23, 4294966912  ;;  %s834_s12 = scalar_lea.vmem [#allocation7], %s4715_s17  ;;  %p5129_p12 = scmp.eq.s32.totalorder %s4478_s29, 0 }
  0xea   : > { %4274 = dma.done.wait (%p5129_p12), [#allocation9], 4096   ;;  %p5130_p6 = pmov %p5129_p12 }
  0xec   : > { %4276 = vsyncadd (%p5130_p6), [#allocation9], 4294963200  ;;  %p5131_p7 = pmov %p5130_p6 }
  0xed   : > { %p5132_p8 = pmov %p5130_p6 }
  0xee   : > { %4278 = dma.done.wait (%p5131_p7), [#allocation12], 3072  }
  0xef   : > { %4280 = vsyncadd (%p5132_p8), [#allocation12], 4294964224  ;;  %p5133_p9 = pmov %p5130_p6 }
  0xf0   : > { %p5134_p0 = pmov %p5130_p6 }
  0xf1   : > { %4282 = dma.done.wait (%p5133_p9), [#allocation15], 3072  }
  0xf2   : > { %4284 = vsyncadd (%p5134_p0), [#allocation15], 4294964224  ;;  %p5135_p2 = pmov %p5134_p0 }
  0xf3   : > { %p5136_p10 = pmov %p5134_p0 }
  0xf4   : > { %4286 = dma.done.wait (%p5135_p2), [#allocation18], 2048  }
  0xf5   : > { %4288 = vsyncadd (%p5136_p10), [#allocation18], 4294965248  ;;  %v4325_v0 = vmov 0   ;;  %v4326_v1 = vmov 0.0   ;;  %v3799_v2 = vld [vmem:[#allocation8 + $0xac] ss:$12 sps:$4 sm:$0xff]   ;;  %v982_v28 = vlaneseq }
  0xf6   : > { %1157 = vmatprep.mubr.bf16.mxu0 %v4325_v0  ;;  %3484 = vmatprep.subr.bf16.mxu1 %v4326_v1  ;;  %v3801_v3 = vld [vmem:[#allocation8 + $0xa8] ss:$12 sps:$4 sm:$0xff]   ;;  %v3804_v5 = vld [vmem:[#allocation8 + $0x90] ss:$12 sps:$4 sm:$0xff]   ;;  %v3807_v7 = vld [vmem:[#allocation8 + $0x78] ss:$12 sps:$4 sm:$0xff]  }
  0xf7   : > { %1125 = vmatprep.subr.bf16.mxu0 %v3799_v2  ;;  %v3802_v4 = vld [vmem:[#allocation8 + $0x94] ss:$12 sps:$4 sm:$0xff]   ;;  %v3805_v6 = vld [vmem:[#allocation8 + $0x7c] ss:$12 sps:$4 sm:$0xff]   ;;  %v3808_v8 = vld [vmem:[#allocation8 + $0x64] ss:$12 sps:$4 sm:$0xff]  }
  0xf8   : > { %1126 = vmatpush1.bf16.msra.mxu0 %v3801_v3  ;;  %v3810_v9 = vld [vmem:[#allocation8 + $0x60] ss:$12 sps:$4 sm:$0xff]   ;;  %v3823_v10 = vld [vmem:[#allocation8 + $0xb0] ss:$12 sps:$4 sm:$0xff]   ;;  %v3824_v12 = vld [vmem:[#allocation8 + $0x98] ss:$12 sps:$4 sm:$0xff]  }
  0xf9   : > { %1127 = vmatprep.subr.bf16.mxu0 %v3802_v4  ;;  %v3811_v11 = vld [vmem:[#allocation8 + $0x4c] ss:$12 sps:$4 sm:$0xff]   ;;  %3485 = vmatpush3.bf16.msra.mxu1 %v3823_v10  ;;  %v3813_v13 = vld [vmem:[#allocation8 + $0x48] ss:$12 sps:$4 sm:$0xff]   ;;  %v3816_v15 = vld [vmem:[#allocation8 + $0x30] ss:$12 sps:$4 sm:$0xff]  }
  0xfa   : > { %3486 = vmatprep.subr.bf16.mxu1 %v4326_v1  ;;  %v3814_v14 = vld [vmem:[#allocation8 + $0x34] ss:$12 sps:$4 sm:$0xff]   ;;  %v3817_v17 = vld [vmem:[#allocation8 + $0x1c] ss:$12 sps:$4 sm:$0xff]   ;;  %v3819_v19 = vld [vmem:[#allocation8 + $0x18] ss:$12 sps:$4 sm:$0xff]  }
  0xfb   : > { %v3825_v16 = vld [vmem:[#allocation8 + $0x80] ss:$12 sps:$4 sm:$0xff]   ;;  %v3826_v18 = vld [vmem:[#allocation8 + $0x68] ss:$12 sps:$4 sm:$0xff]   ;;  %v3820_v20 = vld [vmem:[#allocation8 + $0x4] ss:$12 sps:$4 sm:$0xff]  }
  0xfc   : > { %1128 = vmatpush1.bf16.msra.mxu0 %v3804_v5  ;;  %v3827_v21 = vld [vmem:[#allocation8 + $0x50] ss:$12 sps:$4 sm:$0xff]   ;;  %v3822_v22 = vld [vmem:[#allocation8] ss:$12 sps:$4 sm:$0xff]   ;;  %v3828_v24 = vld [vmem:[#allocation8 + $0x38] ss:$12 sps:$4 sm:$0xff]  }
  0xfd   : > { %1129 = vmatprep.subr.bf16.mxu0 %v3805_v6  ;;  %3487 = vmatpush3.bf16.msra.mxu1 %v3824_v12  ;;  %v4755_v23 = vld [vmem:[%s816_s10] sm:$0xff]  ;;  %vm4327_vm0 = vmmov 0   ;;  %v983_v29 = vshrl.u32 %v982_v28, 7  ;;  %s5137_s24 = sld [smem:[#allocation38_spill]]  ;;  %vm1232_vm1 = vcmask 261120   ;;  %s4328_s14 = smov 64  }
  0xfe   : > { %3488 = vmatprep.subr.bf16.mxu1 %v4326_v1  ;;  %v947_v25 = vpack.c.bf16 %v4755_v23, %v4755_v23  ;;  %v3829_v26 = vld [vmem:[#allocation8 + $0x20] ss:$12 sps:$4 sm:$0xff]   ;;  %v3830_v27 = vld [vmem:[#allocation8 + $0x8] ss:$12 sps:$4 sm:$0xff]   ;;  %3500 = vmatprep.mubr.msk.bf16.mxu1 %vm4327_vm0, %v4326_v1  ;;  %s4329_s21 = smov 96   ;;  %s4330_s1 = smov 32  }
  0xff   : > { %v4771_v30 = vsub.s32 0, %v983_v29  ;;  %v4776_v32 = vsub.s32 1, %v983_v29  ;;  %v992_v45 = vsub.s32 2, %v983_v29  ;;  %vm1473_vm2 = vcmask 1043456   ;;  %v1207_v63 = vld [vmem:[%s834_s12] sm:$0xff]  ;;  %s5138_s6 = sld [smem:[#allocation40_spill]] }
 0x100   : > { %1130 = vmatpush1.bf16.msra.mxu0 %v3807_v7  ;;  %vm1421_vm3 = vcmask 64512   ;;  %vm1668_vm4 = vcmask 523264   ;;  %vm1670_vm5 = vcmask 785408   ;;  %s5139_s25 = sld [smem:[#allocation41_spill]]  ;;  %p940_p4 = scmp.lt.s32.totalorder %s4478_s29, 1  ;;  %vm2300_vm6 = vcmask 130048  }
 0x101   : > { %1131 = vmatprep.subr.bf16.mxu0 %v3808_v8  ;;  %3489 = vmatpush3.bf16.msra.mxu1 %v3825_v16  ;;  %s5143_s0 = sld [smem:[#allocation48_spill]]  ;;  %s939_s7 = scalar_lea.vmem [#allocation19], %s4715_s17 }
 0x102   : > { %3490 = vmatprep.subr.bf16.mxu1 %v4326_v1  ;;  %s941_s12 = scalar_select %p940_p4, %s4478_s29, 1 }
 0x103   : > { %v980_v31 = vld [vmem:[%s5137_s24] sm:$0x7]  ;;  %s5140_s24 = sld [smem:[#allocation36_spill]]  ;;  %s3035_s10 = scalar_lea.sflag [#allocation4], %s4712_s2 }
 0x104   : > { %1132 = vmatpush1.bf16.msra.mxu0 %v3810_v9  ;;  %v985_v33 = vrot.slane %v980_v31, %v4771_v30  ;;  %v989_v34 = vrot.slane %v980_v31, %v4776_v32  ;;  %v993_v48 = vrot.slane %v980_v31, %v992_v45  ;;  %s4331_s22 = smov [#allocation19]  }
 0x105   : > { %1133 = vmatprep.subr.bf16.mxu0 %v3811_v11  ;;  %3491 = vmatpush3.bf16.msra.mxu1 %v3826_v18  ;;  %s4227_s23 = sshll.u32 %s4331_s22, 4  ;;  %s4228_s23 = int_to_ptr.vmem [resolvable:$false] %s4227_s23 }
 0x106   : > { %3492 = vmatprep.subr.bf16.mxu1 %v4326_v1 }
 0x108   : > { %1134 = vmatpush1.bf16.msra.mxu0 %v3813_v13 }
 0x109   : > { %1135 = vmatprep.subr.bf16.mxu0 %v3814_v14  ;;  %3493 = vmatpush3.bf16.msra.mxu1 %v3827_v21  ;;  %s942_s5 = scalar_lea.vmem %s5140_s24, %s941_s12  ;;  %s5145_s12 = sld [smem:[#allocation31_spill]] }
 0x10a   : > { %3494 = vmatprep.subr.bf16.mxu1 %v4326_v1  ;;  %s5146_s24 = sld [smem:[#allocation50_spill]] }
 0x10c   : > { %1136 = vmatpush1.bf16.msra.mxu0 %v3816_v15 }
 0x10d   : > { %1137 = vmatprep.subr.bf16.mxu0 %v3817_v17  ;;  %3495 = vmatpush3.bf16.msra.mxu1 %v3828_v24 }
 0x10e   : > { %3496 = vmatprep.subr.bf16.mxu1 %v4326_v1 }
 0x10f   : > { %p5149_p3 = scmp.ne.s32.totalorder %s5145_s12, 0 }
 0x110   : > { %1138 = vmatpush1.bf16.msra.mxu0 %v3819_v19 }
 0x111   : > { %1139 = vmatprep.subr.bf16.mxu0 %v3820_v20  ;;  %3497 = vmatpush3.bf16.msra.mxu1 %v3829_v26 }
 0x112   : > { %3498 = vmatprep.subr.bf16.mxu1 %v4326_v1 }
 0x114   : > { %1140 = vmatpush1.bf16.msra.mxu0 %v3822_v22 }
 0x115   : > { %3528 = vmatprep.subr.bf16.mxu0 %v4326_v1  ;;  %3499 = vmatpush3.bf16.msra.mxu1 %v3830_v27 }
 0x116   : > { %3504 = vmatprep.subr.bf16.mxu1 %v4326_v1 }
 0x117   : > { %1158 = vmatmul.mubr.bf16.vlgmr.msra.gmra.mxu0 %v947_v25 }
 0x118   : > { %3530 = vmatprep.mubr.msk.bf16.mxu0 %vm4327_vm0, %v4326_v1  ;;  %3501 = vmatmul.mubr.bf16.vlgmr.msra.gmra.mxu1 %v947_v25 }
 0x119   : > { %3506 = vmatprep.mubr.msk.bf16.mxu1 %vm4327_vm0, %v4326_v1 }
 0x1d7   : > { %v1159_v35 = vpop.f32.mrf.mxu0 }
 0x1d8   : > { %v1160_v36 = vadd.f32 %v1159_v35, %v985_v33  ;;  %v1200_v46 = vpop.f32.mrf.mxu1 }
 0x1d9   : > { %v1161_v37 = vpop.f32.mrf.mxu0  ;;  %v1201_v51 = vadd.f32 %v1200_v46, %v993_v48 }
 0x1da   : > { %v1162_v38 = vadd.f32 %v1161_v37, %v989_v34  ;;  %v1206_v40 = vmul.f32 0.17677669, %v1160_v36  ;;  %v3502_v47 = vpop.f32.mrf.mxu1 }
 0x1db   : > { %v1163_v39 = vpop.f32.mrf.mxu0  ;;  %v4791_v52 = vpack.c.bf16 %v1201_v51, %v1201_v51 }
 0x1dc   : > { %v1216_v41 = vpack.c.bf16 %v1162_v38, %v1162_v38  ;;  %v1208_v44 = vpack.c.bf16 %v1206_v40, %v1206_v40  ;;  %v1203_v49 = vpop.f32.mrf.mxu1 }
 0x1dd   : > { %v1164_v42 = vpop.f32.mrf.mxu0  ;;  %v1475_v53 = vsel %vm1473_vm2, %v4791_v52, 0 }
 0x1de   : > { %1220 = vrot.lane.b32.xlu1 %v1216_v41, %s4328_s14  ;;  %1218 = vrot.lane.b32.xlu0 %v1216_v41, %s4329_s21  ;;  %v1237_v43 = vsel %vm1232_vm1, %v1216_v41, 0  ;;  %v3503_v50 = vpop.f32.mrf.mxu1 }
 0x1df   : > { %3505 = vmatpush3.bf16.xpose.msra.mxu1 %v1237_v43  ;;  %3529 = vmatpush3.bf16.msra.mxu0 %v1475_v53 }
 0x1e0   : > { %3510 = vmatprep.subr.bf16.mxu1 %v4326_v1  ;;  %3540 = vmatprep.subr.bf16.mxu0 %v4326_v1 }
 0x1e2   : > { %1212 = vrot.lane.b32.xlu1 %v1208_v44, %s4328_s14  ;;  %1210 = vrot.lane.b32.xlu0 %v1208_v44, %s4329_s21 }
 0x1e6   : > { %1214 = vrot.lane.b32.xlu1 %v1208_v44, %s4330_s1  ;;  %1222 = vrot.lane.b32.xlu0 %v1216_v41, %s4330_s1 }
 0x1e7   : > { %3507 = vmatmul.mubr.msk.bf16.vlgmr.msra.gmra.mxu1 %vm1232_vm1, %v1208_v44 }
 0x1e8   : > { %3512 = vmatprep.mubr.msk.bf16.mxu1 %vm4327_vm0, %v4326_v1 }
 0x250   : > { %v1219_v54 = vpop.permute.xlu0 %1218  ;;  %v1221_v56 = vpop.permute.xlu1 %1220 }
 0x251   : > { %v1283_v55 = vsel %vm1232_vm1, %v1219_v54, 0  ;;  %v1329_v58 = vsel %vm1232_vm1, %v1221_v56, 0 }
 0x252   : > { %3511 = vmatpush3.bf16.xpose.msra.mxu1 %v1283_v55 }
 0x253   : > { %3516 = vmatprep.subr.bf16.mxu1 %v4326_v1 }
 0x254   : > { %v1211_v57 = vpop.permute.xlu0 %1210  ;;  %v1213_v60 = vpop.permute.xlu1 %1212 }
 0x258   : > { %v1223_v59 = vpop.permute.xlu0 %1222  ;;  %v1215_v62 = vpop.permute.xlu1 %1214 }
 0x259   : > { %3513 = vmatmul.mubr.msk.bf16.vlgmr.msra.gmra.mxu1 %vm1232_vm1, %v1211_v57  ;;  %v1375_v61 = vsel %vm1232_vm1, %v1223_v59, 0 }
 0x25a   : > { %3517 = vmatpush3.bf16.xpose.msra.mxu1 %v1329_v58  ;;  %3518 = vmatprep.mubr.msk.bf16.mxu1 %vm4327_vm0, %v4326_v1 }
 0x25b   : > { %3522 = vmatprep.subr.bf16.mxu1 %v4326_v1 }
 0x261   : > { %3519 = vmatmul.mubr.msk.bf16.vlgmr.msra.gmra.mxu1 %vm1232_vm1, %v1213_v60 }
 0x262   : > { %3523 = vmatpush3.bf16.xpose.msra.mxu1 %v1375_v61  ;;  %3524 = vmatprep.mubr.msk.bf16.mxu1 %vm4327_vm0, %v4326_v1 }
 0x263   : > { %3534 = vmatprep.subr.bf16.mxu1 %v4326_v1 }
 0x269   : > { %3525 = vmatmul.mubr.msk.bf16.vlgmr.msra.gmra.mxu1 %vm1232_vm1, %v1215_v62 }
 0x26a   : > { %3536 = vmatprep.mubr.msk.bf16.mxu1 %vm4327_vm0, %v4326_v1 }
 0x2a7   : > { %v1273_v2 = vpop.f32.mrf.mxu1 }
 0x2a8   : > { %v1417_v3 = vadd.f32 %v1273_v2, %v1207_v63 }
 0x2a9   : > { %v3508_v4 = vpop.f32.mrf.mxu1 }
 0x2aa   : > { %v1422_v5 = vsel %vm1421_vm3, %v1417_v3, -inf }
 0x2ab   : > { %1423 = vmax.xlane.f32.xlu0 %v1422_v5  ;;  %v1276_v6 = vpop.f32.mrf.mxu1 }
 0x2ad   : > { %v3509_v7 = vpop.f32.mrf.mxu1 }
 0x319   : > { %v1319_v8 = vpop.f32.mrf.mxu1 }
 0x31a   : > { %v1418_v9 = vadd.f32 %v1319_v8, %v1207_v63 }
 0x31b   : > { %v3514_v10 = vpop.f32.mrf.mxu1 }
 0x31c   : > { %v1425_v11 = vsel %vm1421_vm3, %v1418_v9, -inf }
 0x31d   : > { %1426 = vmax.xlane.f32.xlu1 %v1425_v11  ;;  %v1322_v12 = vpop.f32.mrf.mxu1  ;;  %v3832_v11 = vld [vmem:[#allocation10 + $0x30] sm:$0xff]  }
 0x31f   : > { %v3515_v13 = vpop.f32.mrf.mxu1 }
 0x321   : > { %v1365_v14 = vpop.f32.mrf.mxu1 }
 0x322   : > { %v1419_v15 = vadd.f32 %v1365_v14, %v1207_v63  ;;  %v3833_v14 = vld [vmem:[#allocation10 + $0x28] sm:$0xff]  }
 0x323   : > { %v3520_v16 = vpop.f32.mrf.mxu1 }
 0x324   : > { %v1428_v17 = vsel %vm1421_vm3, %v1419_v15, -inf  ;;  %v3834_v16 = vld [vmem:[#allocation10 + $0x20] sm:$0xff]  }
 0x325   : > { %1429 = vmax.xlane.f32.xlu0 %v1428_v17  ;;  %v1368_v18 = vpop.f32.mrf.mxu1  ;;  %v3835_v17 = vld [vmem:[#allocation10 + $0x18] sm:$0xff]  }
 0x326   : > { %v3836_v18 = vld [vmem:[#allocation10 + $0x10] sm:$0xff]  }
 0x327   : > { %v3521_v19 = vpop.f32.mrf.mxu1 }
 0x328   : > { %v3837_v19 = vld [vmem:[#allocation10 + $0x8] sm:$0xff]  }
 0x329   : > { %v1411_v20 = vpop.f32.mrf.mxu1 }
 0x32a   : > { %v1420_v21 = vadd.f32 %v1411_v20, %v1207_v63 }
 0x32b   : > { %v3526_v22 = vpop.f32.mrf.mxu1 }
 0x32c   : > { %v1431_v24 = vsel %vm1421_vm3, %v1420_v21, -inf  ;;  %v3838_v22 = vld [vmem:[#allocation10] sm:$0xff]  }
 0x32d   : > { %1432 = vmax.xlane.f32.xlu0 %v1431_v24  ;;  %v1414_v25 = vpop.f32.mrf.mxu1 }
 0x32e   : > { %1226 = vrot.lane.b32.xlu1 %v4791_v52, %s4329_s21 }
 0x32f   : > { %v3527_v26 = vpop.f32.mrf.mxu1 }
 0x334   : > { %v1424_v27 = vpop.xlane.xlu0 %1423 }
 0x335   : > { %v1434_v28 = vsub.f32 %v1417_v3, %v1424_v27 }
 0x337   : > { %v1438_v29 = vmul.f32 1.442695, %v1434_v28 }
 0x339   : > { %3919 = vpow2.f32 %v1438_v29 }
 0x346   : > { %v3920_v31 = vpop.eup %3919 }
 0x347   : > { %v1446_v33 = vsel %vm1421_vm3, %v3920_v31, 0.0 }
 0x352   : > { %1447 = vadd.xlane.f32.xlu1 %v1446_v33 }
 0x3a6   : > { %v1427_v34 = vpop.xlane.xlu1 %1426 }
 0x3a7   : > { %v1435_v35 = vsub.f32 %v1418_v9, %v1427_v34  ;;  %v3831_v9 = vld [vmem:[#allocation10 + $0x38] sm:$0xff]  }
 0x3a9   : > { %v1440_v36 = vmul.f32 1.442695, %v1435_v35 }
 0x3aa   : > { %v1227_v37 = vpop.permute.xlu1 %1226 }
 0x3ab   : > { %3921 = vpow2.f32 %v1440_v36  ;;  %v1521_v38 = vsel %vm1473_vm2, %v1227_v37, 0 }
 0x3ac   : > { %3535 = vmatpush3.bf16.msra.mxu1 %v1521_v38 }
 0x3ad   : > { %3546 = vmatprep.subr.bf16.mxu1 %v4326_v1 }
 0x3ae   : > { %v1430_v39 = vpop.xlane.xlu0 %1429 }
 0x3af   : > { %v1436_v40 = vsub.f32 %v1419_v15, %v1430_v39 }
 0x3b1   : > { %v1442_v41 = vmul.f32 1.442695, %v1436_v40 }
 0x3b3   : > { %3923 = vpow2.f32 %v1442_v41 }
 0x3b6   : > { %v1433_v42 = vpop.xlane.xlu0 %1432 }
 0x3b7   : > { %v1437_v43 = vsub.f32 %v1420_v21, %v1433_v42 }
 0x3b8   : > { %v3922_v44 = vpop.eup %3921 }
 0x3b9   : > { %v1444_v45 = vmul.f32 1.442695, %v1437_v43  ;;  %v1449_v46 = vsel %vm1421_vm3, %v3922_v44, 0.0  ;;  %v3298_v43 = vld [vmem:[%s5138_s6] ss:$0 sm:$0xff]  ;;  %s5141_s6 = sld [smem:[#allocation45_spill]] }
 0x3ba   : > { %1450 = vadd.xlane.f32.xlu0 %v1449_v46 }
 0x3bb   : > { %3925 = vpow2.f32 %v1444_v45 }
 0x3c0   : > { %v3924_v47 = vpop.eup %3923 }
 0x3c1   : > { %v1452_v48 = vsel %vm1421_vm3, %v3924_v47, 0.0 }
 0x3c2   : > { %1453 = vadd.xlane.f32.xlu1 %v1452_v48 }
 0x3c8   : > { %v3926_v49 = vpop.eup %3925 }
 0x3c9   : > { %v1455_v50 = vsel %vm1421_vm3, %v3926_v49, 0.0 }
 0x3ca   : > { %1456 = vadd.xlane.f32.xlu0 %v1455_v50  ;;  %v3839_v50 = vld [vmem:[#allocation13 + $0x70] ss:$8 sps:$4 sm:$0xff]  }
 0x3d3   : > { %1230 = vrot.lane.b32.xlu1 %v4791_v52, %s4330_s1 }
 0x3db   : > { %v1448_v51 = vpop.xlane.xlu1 %1447 }
 0x3dc   : > { %3927 = vrcp.f32 %v1448_v51  ;;  %v3841_v51 = vld [vmem:[#allocation13 + $0x74] ss:$8 sps:$4 sm:$0xff]  }
 0x3e0   : > { %1228 = vrot.lane.b32.xlu0 %v4791_v52, %s4328_s14 }
 0x3e9   : > { %v3928_v53 = vpop.eup %3927 }
 0x3ea   : > { %v1462_v54 = vmul.f32 %v3928_v53, %v3920_v31  ;;  %v3844_v53 = vld [vmem:[#allocation13 + $0x64] ss:$8 sps:$4 sm:$0xff]  }
 0x3ec   : > { %v1466_v55 = vpack.c.bf16 %v1462_v54, %v1462_v54  ;;  %v3842_v54 = vld [vmem:[#allocation13 + $0x60] ss:$8 sps:$4 sm:$0xff]  }
 0x3ee   : > { %3531 = vmatmul.mubr.msk.bf16.vlgmr.msra.gmra.mxu0 %vm1421_vm3, %v1466_v55  ;;  %v3847_v55 = vld [vmem:[#allocation13 + $0x54] ss:$8 sps:$4 sm:$0xff]  }
 0x3ef   : > { %3542 = vmatprep.mubr.msk.bf16.mxu0 %vm4327_vm0, %v4326_v1 }
 0x443   : > { %v1451_v56 = vpop.xlane.xlu0 %1450 }
 0x444   : > { %3929 = vrcp.f32 %v1451_v56  ;;  %v3857_v56 = vld [vmem:[#allocation11 + $0x38] sm:$0xff]  }
 0x44b   : > { %v1454_v57 = vpop.xlane.xlu1 %1453 }
 0x44c   : > { %3931 = vrcp.f32 %v1454_v57  ;;  %v3861_v57 = vld [vmem:[#allocation11 + $0x30] sm:$0xff]  }
 0x44f   : > { %v1231_v60 = vpop.permute.xlu1 %1230 }
 0x450   : > { %v1613_v52 = vsel %vm1473_vm2, %v1231_v60, 0  ;;  %v3853_v60 = vld [vmem:[#allocation13 + $0x34] ss:$8 sps:$4 sm:$0xff]  }
 0x451   : > { %v3930_v58 = vpop.eup %3929 }
 0x452   : > { %v1463_v59 = vmul.f32 %v3930_v58, %v3922_v44  ;;  %v3845_v58 = vld [vmem:[#allocation13 + $0x50] ss:$8 sps:$4 sm:$0xff]  }
 0x453   : > { %v1457_v61 = vpop.xlane.xlu0 %1456 }
 0x454   : > { %3933 = vrcp.f32 %v1457_v61  ;;  %v1467_v62 = vpack.c.bf16 %v1463_v59, %v1463_v59  ;;  %v3848_v59 = vld [vmem:[#allocation13 + $0x40] ss:$8 sps:$4 sm:$0xff]   ;;  %v3851_v61 = vld [vmem:[#allocation13 + $0x30] ss:$8 sps:$4 sm:$0xff]  }
 0x456   : > { %3537 = vmatmul.mubr.msk.bf16.vlgmr.msra.gmra.mxu1 %vm1421_vm3, %v1467_v62  ;;  %v3856_v62 = vld [vmem:[#allocation13 + $0x24] ss:$8 sps:$4 sm:$0xff]  }
 0x457   : > { %3547 = vmatpush3.bf16.msra.mxu1 %v1613_v52  ;;  %v1229_v63 = vpop.permute.xlu0 %1228  ;;  %3548 = vmatprep.mubr.msk.bf16.mxu1 %vm4327_vm0, %v4326_v1  ;;  %v3854_v52 = vld [vmem:[#allocation13 + $0x20] ss:$8 sps:$4 sm:$0xff]  }
 0x458   : > { %v1567_v2 = vsel %vm1473_vm2, %v1229_v63, 0  ;;  %3572 = vmatprep.subr.bf16.mxu1 %v4326_v1  ;;  %v3860_v63 = vld [vmem:[#allocation13 + $0x14] ss:$8 sps:$4 sm:$0xff]  }
 0x459   : > { %v3932_v3 = vpop.eup %3931  ;;  %3541 = vmatpush3.bf16.msra.mxu0 %v1567_v2  ;;  %v3858_v2 = vld [vmem:[#allocation13 + $0x10] ss:$8 sps:$4 sm:$0xff]  }
 0x45a   : > { %v1464_v4 = vmul.f32 %v3932_v3, %v3924_v47  ;;  %3552 = vmatprep.subr.bf16.mxu0 %v4326_v1 }
 0x45c   : > { %v1468_v5 = vpack.c.bf16 %v1464_v4, %v1464_v4 }
 0x45e   : > { %3543 = vmatmul.mubr.msk.bf16.vlgmr.msra.gmra.mxu0 %vm1421_vm3, %v1468_v5 }
 0x45f   : > { %3568 = vmatprep.mubr.msk.bf16.mxu0 %vm4327_vm0, %v4326_v1  ;;  %3553 = vmatpush3.bf16.msra.mxu0 %v3831_v9  ;;  %v3865_v9 = vld [vmem:[#allocation11 + $0x28] sm:$0xff]  }
 0x460   : > { %3554 = vmatprep.subr.bf16.mxu0 %v4326_v1 }
 0x461   : > { %v3934_v6 = vpop.eup %3933 }
 0x462   : > { %v1465_v7 = vmul.f32 %v3934_v6, %v3926_v49 }
 0x463   : > { %3555 = vmatpush3.bf16.msra.mxu0 %v3832_v11  ;;  %v946_v11 = vld [vmem:[%s4725_s27 + $0x8] sm:$0xff] }
 0x464   : > { %v1469_v8 = vpack.c.bf16 %v1465_v7, %v1465_v7  ;;  %3556 = vmatprep.subr.bf16.mxu0 %v4326_v1  ;;  %v3864_v7 = vld [vmem:[#allocation13 + $0x4] ss:$8 sps:$4 sm:$0xff]  }
 0x466   : > { %3549 = vmatmul.mubr.msk.bf16.vlgmr.msra.gmra.mxu1 %vm1421_vm3, %v1469_v8  ;;  %v3862_v8 = vld [vmem:[#allocation13] ss:$8 sps:$4 sm:$0xff]  }
 0x467   : > { %3588 = vmatprep.mubr.msk.bf16.mxu1 %vm4327_vm0, %v4326_v1  ;;  %3557 = vmatpush3.bf16.msra.mxu0 %v3833_v14  ;;  %v3867_v14 = vld [vmem:[#allocation11 + $0x18] sm:$0xff]  }
 0x468   : > { %3558 = vmatprep.subr.bf16.mxu0 %v4326_v1  ;;  %3573 = vmatpush3.bf16.msra.mxu1 %v3857_v56 }
 0x469   : > { %3574 = vmatprep.subr.bf16.mxu1 %v4326_v1 }
 0x46b   : > { %3559 = vmatpush3.bf16.msra.mxu0 %v3834_v16  ;;  %v3869_v16 = vld [vmem:[#allocation11 + $0x8] sm:$0xff]  }
 0x46c   : > { %3560 = vmatprep.subr.bf16.mxu0 %v4326_v1  ;;  %3575 = vmatpush3.bf16.msra.mxu1 %v3861_v57 }
 0x46d   : > { %3576 = vmatprep.subr.bf16.mxu1 %v4326_v1 }
 0x46f   : > { %3561 = vmatpush3.bf16.msra.mxu0 %v3835_v17  ;;  %v3870_v17 = vld [vmem:[#allocation11] sm:$0xff]  }
 0x470   : > { %3562 = vmatprep.subr.bf16.mxu0 %v4326_v1  ;;  %3577 = vmatpush3.bf16.msra.mxu1 %v3865_v9 }
 0x471   : > { %3578 = vmatprep.subr.bf16.mxu1 %v4326_v1 }
 0x473   : > { %3563 = vmatpush3.bf16.msra.mxu0 %v3836_v18 }
 0x474   : > { %3564 = vmatprep.subr.bf16.mxu0 %v4326_v1 }
 0x477   : > { %3565 = vmatpush3.bf16.msra.mxu0 %v3837_v19 }
 0x478   : > { %3566 = vmatprep.subr.bf16.mxu0 %v4326_v1 }
 0x47b   : > { %3567 = vmatpush3.bf16.msra.mxu0 %v3838_v22  ;;  %v3307_v22 = vld [vmem:[%s5139_s25] ss:$0 sm:$0xff]  ;;  %s5142_s25 = sld [smem:[#allocation46_spill]] }
 0x47c   : > { %2035 = vmatprep.subr.bf16.mxu0 %v3841_v51 }
 0x4ae   : > { %v1511_v10 = vpop.f32.mrf.mxu0 }
 0x4b0   : > { %v3532_v12 = vpop.f32.mrf.mxu0 }
 0x4b2   : > { %v1514_v13 = vpop.f32.mrf.mxu0 }
 0x4b3   : > { %v3866_v13 = vld [vmem:[#allocation11 + $0x20] sm:$0xff]  }
 0x4b4   : > { %v3533_v15 = vpop.f32.mrf.mxu0  ;;  %3579 = vmatpush3.bf16.msra.mxu1 %v3866_v13 }
 0x4b5   : > { %3580 = vmatprep.subr.bf16.mxu1 %v4326_v1  ;;  %v3868_v15 = vld [vmem:[#allocation11 + $0x10] sm:$0xff]  }
 0x4b8   : > { %3581 = vmatpush3.bf16.msra.mxu1 %v3867_v14 }
 0x4b9   : > { %3582 = vmatprep.subr.bf16.mxu1 %v4326_v1 }
 0x4bc   : > { %3583 = vmatpush3.bf16.msra.mxu1 %v3868_v15 }
 0x4bd   : > { %3584 = vmatprep.subr.bf16.mxu1 %v4326_v1 }
 0x4c0   : > { %3585 = vmatpush3.bf16.msra.mxu1 %v3869_v16 }
 0x4c1   : > { %3586 = vmatprep.subr.bf16.mxu1 %v4326_v1 }
 0x4c4   : > { %3587 = vmatpush3.bf16.msra.mxu1 %v3870_v17 }
 0x4c5   : > { %3592 = vmatprep.subr.bf16.mxu1 %v4326_v1 }
 0x516   : > { %v1557_v20 = vpop.f32.mrf.mxu1 }
 0x517   : > { %1656 = vrot.lane.b32.xlu1 %v1557_v20, %s4330_s1 }
 0x518   : > { %v3538_v21 = vpop.f32.mrf.mxu1 }
 0x51a   : > { %v1560_v24 = vpop.f32.mrf.mxu1 }
 0x51c   : > { %v3539_v25 = vpop.f32.mrf.mxu1 }
 0x51d   : > { %v3308_v25 = vld [vmem:[%s5040_s9] ss:$0 sm:$0xff] }
 0x51e   : > { %v1603_v26 = vpop.f32.mrf.mxu0 }
 0x51f   : > { %1660 = vrot.lane.b32.xlu0 %v1603_v26, %s4328_s14 }
 0x520   : > { %v3544_v27 = vpop.f32.mrf.mxu0 }
 0x522   : > { %v1606_v28 = vpop.f32.mrf.mxu0 }
 0x524   : > { %v3545_v29 = vpop.f32.mrf.mxu0 }
 0x525   : > { %v1943_v29 = vld [vmem:[%s5044_s13] sm:$0x3] }
 0x526   : > { %v1649_v31 = vpop.f32.mrf.mxu1 }
 0x527   : > { %1664 = vrot.lane.b32.xlu1 %v1649_v31, %s4329_s21  ;;  %v1948_v31 = vrot.slane %v1943_v29, %v4771_v30 }
 0x528   : > { %v3550_v33 = vpop.f32.mrf.mxu1 }
 0x52a   : > { %v1652_v34 = vpop.f32.mrf.mxu1 }
 0x52b   : > { %v1952_v34 = vrot.slane %v1943_v29, %v4776_v32 }
 0x52c   : > { %v3551_v35 = vpop.f32.mrf.mxu1 }
 0x589   : > { %v1657_v36 = vpop.permute.xlu1 %1656 }
 0x58a   : > { %v1667_v38 = vsel %vm1232_vm1, %v1511_v10, %v1657_v36  ;;  %v945_v10 = vld [vmem:[%s4725_s27] sm:$0xff]  ;;  %s5144_s27 = sld [smem:[#allocation49_spill]] }
 0x58b   : > { %v1926_v12 = vpack.c.bf16 %v946_v11, %v945_v10 }
 0x591   : > { %v1661_v37 = vpop.permute.xlu0 %1660 }
 0x592   : > { %v1669_v39 = vsel %vm1668_vm4, %v1667_v38, %v1661_v37 }
 0x599   : > { %v1665_v40 = vpop.permute.xlu1 %1664 }
 0x59a   : > { %v1671_v41 = vsel %vm1670_vm5, %v1669_v39, %v1665_v40 }
 0x59b   : > { %v1672_v42 = vpack.c.bf16 %v1671_v41, %v1671_v41 }
 0x59d   : > { %3569 = vmatmul.mubr.bf16.vlgmr.msra.gmra.mxu0 %v1672_v42 }
 0x59e   : > { %2067 = vmatprep.mubr.bf16.mxu0 %v4325_v0  ;;  %2036 = vmatpush1.bf16.msra.mxu0 %v3839_v50 }
 0x59f   : > { %2037 = vmatprep.subr.bf16.mxu0 %v3844_v53 }
 0x5a2   : > { %2038 = vmatpush1.bf16.msra.mxu0 %v3842_v54 }
 0x5a3   : > { %2039 = vmatprep.subr.bf16.mxu0 %v3847_v55 }
 0x5a6   : > { %2040 = vmatpush1.bf16.msra.mxu0 %v3845_v58 }
 0x65d   : > { %v1778_v44 = vpop.f32.mrf.mxu0 }
 0x65e   : > { %v1779_v45 = vadd.f32 %v3298_v43, %v1778_v44 }
 0x65f   : > { %v3570_v46 = vpop.f32.mrf.mxu0 }
 0x660   : > { %v1784_v47 = vadd.f32 %v1779_v45, %v4755_v23  ;;  %v3850_v23 = vld [vmem:[#allocation13 + $0x44] ss:$8 sps:$4 sm:$0xff]   ;;  %v3309_v45 = vld [vmem:[%s5042_s11] ss:$0 sm:$0xff] }
 0x661   : > { %v1781_v48 = vpop.f32.mrf.mxu0  ;;  %2041 = vmatprep.subr.bf16.mxu0 %v3850_v23 }
 0x662   : > { %1787 = vadd.xlane.f32.xlu0 %v1784_v47  ;;  %2042 = vmatpush1.bf16.msra.mxu0 %v3848_v59 }
 0x663   : > { %v3571_v49 = vpop.f32.mrf.mxu0  ;;  %2043 = vmatprep.subr.bf16.mxu0 %v3853_v60 }
 0x666   : > { %2044 = vmatpush1.bf16.msra.mxu0 %v3851_v61 }
 0x667   : > { %2045 = vmatprep.subr.bf16.mxu0 %v3856_v62  ;;  %v3338_v62 = vld [vmem:[%s942_s5] ss:$0 sm:$0xff] }
 0x66a   : > { %2046 = vmatpush1.bf16.msra.mxu0 %v3854_v52 }
 0x66b   : > { %2047 = vmatprep.subr.bf16.mxu0 %v3860_v63 }
 0x66e   : > { %2048 = vmatpush1.bf16.msra.mxu0 %v3858_v2 }
 0x66f   : > { %2049 = vmatprep.subr.bf16.mxu0 %v3864_v7 }
 0x672   : > { %2050 = vmatpush1.bf16.msra.mxu0 %v3862_v8 }
 0x673   : > { %3616 = vmatprep.subr.bf16.mxu0 %v4326_v1 }
 0x675   : > { %2068 = vmatmul.mubr.bf16.vlgmr.msra.gmra.mxu0 %v1926_v12 }
 0x676   : > { %3618 = vmatprep.mubr.msk.bf16.mxu0 %vm4327_vm0, %v4326_v1 }
 0x6eb   : > { %v1788_v3 = vpop.xlane.xlu0 %1787 }
 0x6ec   : > { %v1790_v4 = vmul.f32 0.0078125, %v1788_v3 }
 0x6ee   : > { %v1791_v5 = vsub.f32 %v1784_v47, %v1790_v4 }
 0x6f0   : > { %v1792_v6 = vmul.f32 %v1791_v5, %v1791_v5 }
 0x6f2   : > { %1793 = vadd.xlane.f32.xlu1 %v1792_v6 }
 0x735   : > { %v2069_v33 = vpop.f32.mrf.mxu0 }
 0x736   : > { %v2070_v36 = vadd.f32 %v2069_v33, %v1948_v31 }
 0x737   : > { %v2071_v35 = vpop.f32.mrf.mxu0 }
 0x738   : > { %v2072_v38 = vadd.f32 %v2071_v35, %v1952_v34 }
 0x739   : > { %v2073_v37 = vpop.f32.mrf.mxu0 }
 0x73a   : > { %v2074_v39 = vadd.f32 %v2073_v37, %v1948_v31 }
 0x73b   : > { %v2075_v40 = vpop.f32.mrf.mxu0 }
 0x73c   : > { %v2087_v41 = vpack.c.bf16 %v2074_v39, %v2070_v36  ;;  %v2076_v42 = vadd.f32 %v2075_v40, %v1952_v34 }
 0x73e   : > { %2089 = vrot.lane.b32.xlu0 %v2087_v41, %s4329_s21  ;;  %v4894_v43 = vpack.c.bf16 %v2076_v42, %v2072_v38  ;;  %v2110_v44 = vsel %vm1232_vm1, %v2087_v41, 0 }
 0x740   : > { %3617 = vmatpush3.bf16.msra.mxu0 %v4894_v43 }
 0x741   : > { %3628 = vmatprep.subr.bf16.mxu0 %v4326_v1 }
 0x742   : > { %2091 = vrot.lane.b32.xlu0 %v2087_v41, %s4328_s14 }
 0x746   : > { %2093 = vrot.lane.b32.xlu0 %v2087_v41, %s4330_s1 }
 0x77b   : > { %v1794_v18 = vpop.xlane.xlu1 %1793 }
 0x77c   : > { %v1795_v19 = vmul.f32 0.0078125, %v1794_v18 }
 0x77e   : > { %v1796_v20 = vadd.f32 1e-05, %v1795_v19 }
 0x780   : > { %3935 = vrsqrt.f32 %v1796_v20 }
 0x78d   : > { %v3936_v21 = vpop.eup %3935 }
 0x78e   : > { %v1798_v24 = vmul.f32 %v3936_v21, %v1791_v5 }
 0x790   : > { %v1805_v26 = vmul.f32 %v3307_v22, %v1798_v24 }
 0x792   : > { %v4882_v27 = vadd.f32 %v3308_v25, %v1805_v26 }
 0x794   : > { %v1813_v28 = vpack.c.bf16 %v4882_v27, %v4882_v27 }
 0x796   : > { %3589 = vmatmul.mubr.bf16.vlgmr.msra.gmra.mxu1 %v1813_v28 }
 0x797   : > { %3594 = vmatprep.mubr.msk.bf16.mxu1 %vm4327_vm0, %v4326_v1  ;;  %3593 = vmatpush3.bf16.xpose.msra.mxu1 %v2110_v44 }
 0x798   : > { %3598 = vmatprep.subr.bf16.mxu1 %v4326_v1 }
 0x7b0   : > { %v2090_v51 = vpop.permute.xlu0 %2089 }
 0x7b1   : > { %v2156_v54 = vsel %vm1232_vm1, %v2090_v51, 0 }
 0x7b4   : > { %v2092_v56 = vpop.permute.xlu0 %2091 }
 0x7b5   : > { %v2202_v58 = vsel %vm1232_vm1, %v2092_v56, 0 }
 0x7b8   : > { %v2094_v23 = vpop.permute.xlu0 %2093 }
 0x7b9   : > { %v2248_v60 = vsel %vm1232_vm1, %v2094_v23, 0 }
 0x856   : > { %v1919_v46 = vpop.f32.mrf.mxu1 }
 0x857   : > { %v1920_v47 = vadd.f32 %v3309_v45, %v1919_v46 }
 0x858   : > { %v3590_v48 = vpop.f32.mrf.mxu1 }
 0x859   : > { %v1925_v49 = vmul.f32 0.17677669, %v1920_v47 }
 0x85a   : > { %v1922_v50 = vpop.f32.mrf.mxu1 }
 0x85b   : > { %v2079_v53 = vpack.c.bf16 %v1925_v49, %v1925_v49 }
 0x85c   : > { %v3591_v55 = vpop.f32.mrf.mxu1 }
 0x85d   : > { %2081 = vrot.lane.b32.xlu1 %v2079_v53, %s4329_s21  ;;  %3595 = vmatmul.mubr.msk.bf16.vlgmr.msra.gmra.mxu1 %vm1232_vm1, %v2079_v53 }
 0x85e   : > { %3599 = vmatpush3.bf16.xpose.msra.mxu1 %v2156_v54  ;;  %3600 = vmatprep.mubr.msk.bf16.mxu1 %vm4327_vm0, %v4326_v1 }
 0x85f   : > { %3604 = vmatprep.subr.bf16.mxu1 %v4326_v1 }
 0x861   : > { %2083 = vrot.lane.b32.xlu1 %v2079_v53, %s4328_s14 }
 0x865   : > { %2085 = vrot.lane.b32.xlu1 %v2079_v53, %s4330_s1 }
 0x8cf   : > { %v2082_v57 = vpop.permute.xlu1 %2081 }
 0x8d0   : > { %3601 = vmatmul.mubr.msk.bf16.vlgmr.msra.gmra.mxu1 %vm1232_vm1, %v2082_v57 }
 0x8d1   : > { %3605 = vmatpush3.bf16.xpose.msra.mxu1 %v2202_v58  ;;  %3606 = vmatprep.mubr.msk.bf16.mxu1 %vm4327_vm0, %v4326_v1 }
 0x8d2   : > { %3610 = vmatprep.subr.bf16.mxu1 %v4326_v1 }
 0x8d3   : > { %v2084_v59 = vpop.permute.xlu1 %2083 }
 0x8d7   : > { %v2086_v61 = vpop.permute.xlu1 %2085 }
 0x8d8   : > { %3607 = vmatmul.mubr.msk.bf16.vlgmr.msra.gmra.mxu1 %vm1232_vm1, %v2084_v59 }
 0x8d9   : > { %3611 = vmatpush3.bf16.xpose.msra.mxu1 %v2248_v60  ;;  %3612 = vmatprep.mubr.msk.bf16.mxu1 %vm4327_vm0, %v4326_v1 }
 0x8da   : > { %3622 = vmatprep.subr.bf16.mxu1 %v4326_v1 }
 0x8e0   : > { %3613 = vmatmul.mubr.msk.bf16.vlgmr.msra.gmra.mxu1 %vm1232_vm1, %v2086_v61 }
 0x8e1   : > { %3624 = vmatprep.mubr.msk.bf16.mxu1 %vm4327_vm0, %v4326_v1 }
 0x91d   : > { %v2146_v52 = vpop.f32.mrf.mxu1 }
 0x91e   : > { %v2296_v63 = vadd.f32 %v3338_v62, %v2146_v52 }
 0x91f   : > { %v3596_v2 = vpop.f32.mrf.mxu1 }
 0x920   : > { %v2301_v3 = vsel %vm2300_vm6, %v2296_v63, -inf }
 0x921   : > { %2302 = vmax.xlane.f32.xlu0 %v2301_v3  ;;  %v2149_v4 = vpop.f32.mrf.mxu1 }
 0x922   : > { %v3871_v4 = vld [vmem:[#allocation14 + $0x38] sm:$0xff]  }
 0x923   : > { %v3597_v5 = vpop.f32.mrf.mxu1 }
 0x990   : > { %v2192_v6 = vpop.f32.mrf.mxu1 }
 0x991   : > { %v2297_v7 = vadd.f32 %v3338_v62, %v2192_v6  ;;  %v3872_v6 = vld [vmem:[#allocation14 + $0x30] sm:$0xff]  }
 0x992   : > { %v3602_v8 = vpop.f32.mrf.mxu1 }
 0x993   : > { %v2304_v9 = vsel %vm2300_vm6, %v2297_v7, -inf }
 0x994   : > { %2305 = vmax.xlane.f32.xlu1 %v2304_v9  ;;  %v2195_v10 = vpop.f32.mrf.mxu1  ;;  %v3873_v9 = vld [vmem:[#allocation14 + $0x28] sm:$0xff]  }
 0x996   : > { %v3603_v11 = vpop.f32.mrf.mxu1 }
 0x997   : > { %v3874_v11 = vld [vmem:[#allocation14 + $0x20] sm:$0xff]  }
 0x998   : > { %v2238_v12 = vpop.f32.mrf.mxu1 }
 0x999   : > { %v2298_v13 = vadd.f32 %v3338_v62, %v2238_v12  ;;  %v3875_v12 = vld [vmem:[#allocation14 + $0x18] sm:$0xff]  }
 0x99a   : > { %v3608_v14 = vpop.f32.mrf.mxu1 }
 0x99b   : > { %v2307_v15 = vsel %vm2300_vm6, %v2298_v13, -inf }
 0x99c   : > { %2308 = vmax.xlane.f32.xlu0 %v2307_v15  ;;  %v2241_v16 = vpop.f32.mrf.mxu1 }
 0x99d   : > { %v3878_v16 = vld [vmem:[#allocation14] sm:$0xff]  }
 0x99e   : > { %v3609_v17 = vpop.f32.mrf.mxu1 }
 0x9a0   : > { %v2284_v18 = vpop.f32.mrf.mxu1 }
 0x9a1   : > { %v2299_v19 = vadd.f32 %v3338_v62, %v2284_v18 }
 0x9a2   : > { %v3614_v20 = vpop.f32.mrf.mxu1 }
 0x9a3   : > { %v2310_v21 = vsel %vm2300_vm6, %v2299_v19, -inf }
 0x9a4   : > { %2311 = vmax.xlane.f32.xlu0 %v2310_v21  ;;  %v2287_v22 = vpop.f32.mrf.mxu1 }
 0x9a5   : > { %2097 = vrot.lane.b32.xlu1 %v4894_v43, %s4329_s21 }
 0x9a6   : > { %v3615_v24 = vpop.f32.mrf.mxu1 }
 0x9aa   : > { %v2303_v25 = vpop.xlane.xlu0 %2302 }
 0x9ab   : > { %v2313_v26 = vsub.f32 %v2296_v63, %v2303_v25 }
 0x9ad   : > { %v2317_v28 = vmul.f32 1.442695, %v2313_v26 }
 0x9af   : > { %3937 = vpow2.f32 %v2317_v28 }
 0x9bc   : > { %v3938_v29 = vpop.eup %3937 }
 0x9bd   : > { %v2325_v31 = vsel %vm2300_vm6, %v3938_v29, 0.0 }
 0x9c9   : > { %2326 = vadd.xlane.f32.xlu1 %v2325_v31 }
 0xa1d   : > { %v2306_v33 = vpop.xlane.xlu1 %2305 }
 0xa1e   : > { %v2314_v34 = vsub.f32 %v2297_v7, %v2306_v33 }
 0xa20   : > { %v2319_v35 = vmul.f32 1.442695, %v2314_v34 }
 0xa21   : > { %v2098_v36 = vpop.permute.xlu1 %2097 }
 0xa22   : > { %3939 = vpow2.f32 %v2319_v35  ;;  %3623 = vmatpush3.bf16.msra.mxu1 %v2098_v36 }
 0xa23   : > { %3634 = vmatprep.subr.bf16.mxu1 %v4326_v1 }
 0xa25   : > { %v2309_v37 = vpop.xlane.xlu0 %2308 }
 0xa26   : > { %v2315_v38 = vsub.f32 %v2298_v13, %v2309_v37  ;;  %v3877_v13 = vld [vmem:[#allocation14 + $0x8] sm:$0xff]   ;;  %v3343_v37 = vld [vmem:[%s5046_s15] ss:$0 sm:$0xff] }
 0xa28   : > { %v2321_v39 = vmul.f32 1.442695, %v2315_v38 }
 0xa2a   : > { %3941 = vpow2.f32 %v2321_v39 }
 0xa2d   : > { %v2312_v40 = vpop.xlane.xlu0 %2311 }
 0xa2e   : > { %v2316_v41 = vsub.f32 %v2299_v19, %v2312_v40 }
 0xa2f   : > { %v3940_v42 = vpop.eup %3939 }
 0xa30   : > { %v2323_v44 = vmul.f32 1.442695, %v2316_v41  ;;  %v2328_v45 = vsel %vm2300_vm6, %v3940_v42, 0.0 }
 0xa31   : > { %2329 = vadd.xlane.f32.xlu0 %v2328_v45  ;;  %v3879_v45 = vld [vmem:[#allocation16 + $0x70] ss:$8 sps:$4 sm:$0xff]  }
 0xa32   : > { %3943 = vpow2.f32 %v2323_v44 }
 0xa37   : > { %v3942_v46 = vpop.eup %3941 }
 0xa38   : > { %v2331_v47 = vsel %vm2300_vm6, %v3942_v46, 0.0 }
 0xa39   : > { %2332 = vadd.xlane.f32.xlu1 %v2331_v47  ;;  %v3884_v47 = vld [vmem:[#allocation16 + $0x64] ss:$8 sps:$4 sm:$0xff]  }
 0xa3f   : > { %v3944_v48 = vpop.eup %3943 }
 0xa40   : > { %v2334_v49 = vsel %vm2300_vm6, %v3944_v48, 0.0 }
 0xa41   : > { %2335 = vadd.xlane.f32.xlu0 %v2334_v49 }
 0xa4a   : > { %2103 = vrot.lane.b32.xlu1 %v4894_v43, %s4330_s1 }
 0xa52   : > { %v2327_v50 = vpop.xlane.xlu1 %2326 }
 0xa53   : > { %3945 = vrcp.f32 %v2327_v50 }
 0xa57   : > { %2100 = vrot.lane.b32.xlu0 %v4894_v43, %s4328_s14 }
 0xa60   : > { %v3946_v51 = vpop.eup %3945 }
 0xa61   : > { %v2341_v53 = vmul.f32 %v3946_v51, %v3938_v29 }
 0xa63   : > { %v2345_v54 = vpack.c.bf16 %v2341_v53, %v2341_v53 }
 0xa65   : > { %3619 = vmatmul.mubr.msk.bf16.vlgmr.msra.gmra.mxu0 %vm2300_vm6, %v2345_v54  ;;  %v3887_v54 = vld [vmem:[#allocation16 + $0x54] ss:$8 sps:$4 sm:$0xff]  }
 0xa66   : > { %3630 = vmatprep.mubr.msk.bf16.mxu0 %vm4327_vm0, %v4326_v1 }
 0xaba   : > { %v2330_v55 = vpop.xlane.xlu0 %2329 }
 0xabb   : > { %3947 = vrcp.f32 %v2330_v55  ;;  %v3885_v55 = vld [vmem:[#allocation16 + $0x50] ss:$8 sps:$4 sm:$0xff]  }
 0xac2   : > { %v2333_v56 = vpop.xlane.xlu1 %2332 }
 0xac3   : > { %3949 = vrcp.f32 %v2333_v56  ;;  %v3890_v56 = vld [vmem:[#allocation16 + $0x44] ss:$8 sps:$4 sm:$0xff]  }
 0xac6   : > { %v2104_v60 = vpop.permute.xlu1 %2103 }
 0xac8   : > { %v3948_v57 = vpop.eup %3947 }
 0xac9   : > { %v2342_v58 = vmul.f32 %v3948_v57, %v3940_v42  ;;  %v3893_v57 = vld [vmem:[#allocation16 + $0x34] ss:$8 sps:$4 sm:$0xff]  }
 0xaca   : > { %v2336_v23 = vpop.xlane.xlu0 %2335 }
 0xacb   : > { %3951 = vrcp.f32 %v2336_v23  ;;  %v2346_v59 = vpack.c.bf16 %v2342_v58, %v2342_v58  ;;  %v3891_v58 = vld [vmem:[#allocation16 + $0x30] ss:$8 sps:$4 sm:$0xff]   ;;  %v3896_v23 = vld [vmem:[#allocation16 + $0x24] ss:$8 sps:$4 sm:$0xff]  }
 0xacd   : > { %3625 = vmatmul.mubr.msk.bf16.vlgmr.msra.gmra.mxu1 %vm2300_vm6, %v2346_v59  ;;  %v3894_v59 = vld [vmem:[#allocation16 + $0x20] ss:$8 sps:$4 sm:$0xff]  }
 0xace   : > { %3635 = vmatpush3.bf16.msra.mxu1 %v2104_v60  ;;  %v2101_v43 = vpop.permute.xlu0 %2100  ;;  %3636 = vmatprep.mubr.msk.bf16.mxu1 %vm4327_vm0, %v4326_v1  ;;  %v3899_v60 = vld [vmem:[#allocation16 + $0x14] ss:$8 sps:$4 sm:$0xff]  }
 0xacf   : > { %3629 = vmatpush3.bf16.msra.mxu0 %v2101_v43  ;;  %v3897_v43 = vld [vmem:[#allocation16 + $0x10] ss:$8 sps:$4 sm:$0xff]  }
 0xad0   : > { %v3950_v61 = vpop.eup %3949  ;;  %3640 = vmatprep.subr.bf16.mxu0 %v4326_v1 }
 0xad1   : > { %v2343_v62 = vmul.f32 %v3950_v61, %v3942_v46  ;;  %v3881_v46 = vld [vmem:[#allocation16 + $0x74] ss:$8 sps:$4 sm:$0xff]   ;;  %v3902_v61 = vld [vmem:[#allocation16 + $0x4] ss:$8 sps:$4 sm:$0xff]  }
 0xad2   : > { %2785 = vmatprep.subr.bf16.mxu1 %v3881_v46 }
 0xad3   : > { %v2347_v52 = vpack.c.bf16 %v2343_v62, %v2343_v62  ;;  %v3900_v62 = vld [vmem:[#allocation16] ss:$8 sps:$4 sm:$0xff]  }
 0xad5   : > { %3631 = vmatmul.mubr.msk.bf16.vlgmr.msra.gmra.mxu0 %vm2300_vm6, %v2347_v52  ;;  %v3903_v52 = vld [vmem:[#allocation17 + $0x78] sm:$0xff]  }
 0xad6   : > { %3656 = vmatprep.mubr.msk.bf16.mxu0 %vm4327_vm0, %v4326_v1  ;;  %3641 = vmatpush3.bf16.msra.mxu0 %v3871_v4  ;;  %v3907_v4 = vld [vmem:[#allocation17 + $0x68] sm:$0xff]  }
 0xad7   : > { %3642 = vmatprep.subr.bf16.mxu0 %v4326_v1 }
 0xad8   : > { %v3952_v63 = vpop.eup %3951 }
 0xad9   : > { %v2344_v2 = vmul.f32 %v3952_v63, %v3944_v48  ;;  %v3882_v48 = vld [vmem:[#allocation16 + $0x60] ss:$8 sps:$4 sm:$0xff]   ;;  %v3904_v63 = vld [vmem:[#allocation17 + $0x38] sm:$0xff]  }
 0xada   : > { %3643 = vmatpush3.bf16.msra.mxu0 %v3872_v6  ;;  %v3909_v6 = vld [vmem:[#allocation17 + $0x60] sm:$0xff]  }
 0xadb   : > { %v2348_v3 = vpack.c.bf16 %v2344_v2, %v2344_v2  ;;  %3644 = vmatprep.subr.bf16.mxu0 %v4326_v1  ;;  %v3905_v2 = vld [vmem:[#allocation17 + $0x70] sm:$0xff]  }
 0xadd   : > { %3637 = vmatmul.mubr.msk.bf16.vlgmr.msra.gmra.mxu1 %vm2300_vm6, %v2348_v3  ;;  %v3906_v3 = vld [vmem:[#allocation17 + $0x30] sm:$0xff]  }
 0xade   : > { %2817 = vmatprep.mubr.bf16.mxu1 %v4325_v0  ;;  %3645 = vmatpush3.bf16.msra.mxu0 %v3873_v9  ;;  %v3876_v0 = vld [vmem:[#allocation14 + $0x10] sm:$0xff]   ;;  %v3912_v9 = vld [vmem:[#allocation17 + $0x18] sm:$0xff]  }
 0xadf   : > { %3646 = vmatprep.subr.bf16.mxu0 %v4326_v1  ;;  %2786 = vmatpush1.bf16.msra.mxu1 %v3879_v45 }
 0xae0   : > { %2787 = vmatprep.subr.bf16.mxu1 %v3884_v47 }
 0xae2   : > { %3647 = vmatpush3.bf16.msra.mxu0 %v3874_v11  ;;  %v3914_v11 = vld [vmem:[#allocation17 + $0x10] sm:$0xff]  }
 0xae3   : > { %3648 = vmatprep.subr.bf16.mxu0 %v4326_v1  ;;  %2788 = vmatpush1.bf16.msra.mxu1 %v3882_v48 }
 0xae4   : > { %2789 = vmatprep.subr.bf16.mxu1 %v3887_v54 }
 0xae6   : > { %3649 = vmatpush3.bf16.msra.mxu0 %v3875_v12 }
 0xae7   : > { %3650 = vmatprep.subr.bf16.mxu0 %v4326_v1  ;;  %2790 = vmatpush1.bf16.msra.mxu1 %v3885_v55 }
 0xae8   : > { %2791 = vmatprep.subr.bf16.mxu1 %v3890_v56  ;;  %v3387_v56 = vld [vmem:[%s5146_s24] ss:$0 sm:$0xff] }
 0xaea   : > { %3651 = vmatpush3.bf16.msra.mxu0 %v3876_v0 }
 0xaeb   : > { %3652 = vmatprep.subr.bf16.mxu0 %v4326_v1 }
 0xaee   : > { %3653 = vmatpush3.bf16.msra.mxu0 %v3877_v13 }
 0xaef   : > { %3654 = vmatprep.subr.bf16.mxu0 %v4326_v1 }
 0xaf2   : > { %3655 = vmatpush3.bf16.msra.mxu0 %v3878_v16 }
 0xaf3   : > { %3462 = vmatprep.subr.bf16.mxu0 %v3903_v52 }
 0xb25   : > { %v2386_v5 = vpop.f32.mrf.mxu0 }
 0xb27   : > { %v3620_v7 = vpop.f32.mrf.mxu0 }
 0xb28   : > { %v3910_v7 = vld [vmem:[#allocation17 + $0x20] sm:$0xff]  }
 0xb29   : > { %v2389_v8 = vpop.f32.mrf.mxu0 }
 0xb2a   : > { %v3911_v8 = vld [vmem:[#allocation17 + $0x58] sm:$0xff]  }
 0xb2b   : > { %v3621_v10 = vpop.f32.mrf.mxu0 }
 0xb2c   : > { %v3913_v10 = vld [vmem:[#allocation17 + $0x50] sm:$0xff]  }
 0xb8d   : > { %v2429_v14 = vpop.f32.mrf.mxu1 }
 0xb8e   : > { %2522 = vrot.lane.b32.xlu1 %v2429_v14, %s4330_s1  ;;  %s5147_s1 = sld [smem:[#allocation51_spill]] }
 0xb8f   : > { %v3626_v15 = vpop.f32.mrf.mxu1 }
 0xb90   : > { %v3352_v15 = vld [vmem:[%s5141_s6] ss:$0 sm:$0xff]  ;;  %s3048_s6 = sshll.u32 %s939_s7, 4  ;;  %s3049_s6 = int_to_ptr.vmem [resolvable:$true] %s3048_s6 }
 0xb91   : > { %v2432_v17 = vpop.f32.mrf.mxu1  ;;  %p4230_p11 = scmp.lt.s32.totalorder %s3049_s6, %s4228_s23 }
 0xb92   : > { %v3353_v17 = vld [vmem:[%s5142_s25] ss:$0 sm:$0xff]  ;;  %s5148_s25 = sld [smem:[#allocation52_spill]] }
 0xb93   : > { %v3627_v18 = vpop.f32.mrf.mxu1 }
 0xb95   : > { %v2472_v19 = vpop.f32.mrf.mxu0 }
 0xb96   : > { %2526 = vrot.lane.b32.xlu0 %v2472_v19, %s4328_s14 }
 0xb97   : > { %v3632_v20 = vpop.f32.mrf.mxu0 }
 0xb99   : > { %v2475_v21 = vpop.f32.mrf.mxu0 }
 0xb9a   : > { %v3915_v21 = vld [vmem:[#allocation17 + $0x48] sm:$0xff]  }
 0xb9b   : > { %v3633_v22 = vpop.f32.mrf.mxu0 }
 0xb9c   : > { %v3916_v22 = vld [vmem:[#allocation17 + $0x8] sm:$0xff]  }
 0xb9d   : > { %v2515_v24 = vpop.f32.mrf.mxu1 }
 0xb9e   : > { %2530 = vrot.lane.b32.xlu1 %v2515_v24, %s4329_s21  ;;  %v3917_v24 = vld [vmem:[#allocation17 + $0x40] sm:$0xff]   ;;  %s3390_s21 = sshll.u32 %s4478_s29, 7  ;;  %s4229_s29 = scalar_lea.vmem %s4228_s23, 256 }
 0xb9f   : > { %v3638_v25 = vpop.f32.mrf.mxu1  ;;  %s3046_s30 = scalar_lea.hbm %s5148_s25, %s3390_s21 }
 0xba0   : > { %v3918_v25 = vld [vmem:[#allocation17] sm:$0xff]  }
 0xba1   : > { %v2518_v26 = vpop.f32.mrf.mxu1 }
 0xba2   : > { %v2693_v26 = vld [vmem:[%s5143_s0] sm:$0x3]  ;;  %s4223_s0 = scalar_lea.vmem %s3049_s6, 128 }
 0xba3   : > { %v3639_v28 = vpop.f32.mrf.mxu1  ;;  %p4224_p5 = scmp.ne.s32.totalorder %s3049_s6, %s4223_s0  ;;  %p4231_p12 = scmp.lt.s32.totalorder %s4229_s29, %s4223_s0 }
 0xba4   : > { %v2698_v28 = vrot.slane %v2693_v26, %v4771_v30 }
 0xba5   : > { %p4225_p13 = pnand %p4224_p5, %p5149_p3  ;;  %p4232_p6 = por %p4231_p12, %p4230_p11 }
 0xba7   : > { %p4226_p1 = pneg %p4225_p13 }
 0xba9   : > { %p4233_p7 = pnand %p4232_p6, %p4226_p1 }
 0xc00   : > { %v2523_v29 = vpop.permute.xlu1 %2522 }
 0xc01   : > { %v2533_v1 = vsel %vm1232_vm1, %v2386_v5, %v2523_v29  ;;  %v3908_v5 = vld [vmem:[#allocation17 + $0x28] sm:$0xff]   ;;  %v2702_v29 = vrot.slane %v2693_v26, %v4776_v32 }
 0xc08   : > { %v2527_v31 = vpop.permute.xlu0 %2526 }
 0xc09   : > { %v2534_v33 = vsel %vm1668_vm4, %v2533_v1, %v2527_v31 }
 0xc10   : > { %v2531_v34 = vpop.permute.xlu1 %2530 }
 0xc11   : > { %v2535_v35 = vsel %vm1670_vm5, %v2534_v33, %v2531_v34 }
 0xc12   : > { %v2536_v36 = vpack.c.bf16 %v2535_v35, %v2535_v35 }
 0xc14   : > { %3657 = vmatmul.mubr.bf16.vlgmr.msra.gmra.mxu0 %v2536_v36 }
 0xc15   : > { %3463 = vmatpush3.bf16.msra.mxu0 %v3904_v63 }
 0xc16   : > { %3464 = vmatprep.subr.bf16.mxu0 %v3905_v2 }
 0xc19   : > { %3465 = vmatpush3.bf16.msra.mxu0 %v3906_v3 }
 0xc1a   : > { %3466 = vmatprep.subr.bf16.mxu0 %v3907_v4 }
 0xc1d   : > { %3467 = vmatpush3.bf16.msra.mxu0 %v3908_v5 }
 0xc1e   : > { %3468 = vmatprep.subr.bf16.mxu0 %v3909_v6 }
 0xc21   : > { %3469 = vmatpush3.bf16.msra.mxu0 %v3910_v7 }
 0xc22   : > { %3470 = vmatprep.subr.bf16.mxu0 %v3911_v8 }
 0xc25   : > { %3471 = vmatpush3.bf16.msra.mxu0 %v3912_v9 }
 0xc26   : > { %3472 = vmatprep.subr.bf16.mxu0 %v3913_v10 }
 0xc29   : > { %3473 = vmatpush3.bf16.msra.mxu0 %v3914_v11 }
 0xc2a   : > { %3474 = vmatprep.subr.bf16.mxu0 %v3915_v21 }
 0xc2d   : > { %3475 = vmatpush3.bf16.msra.mxu0 %v3916_v22 }
 0xc2e   : > { %3476 = vmatprep.subr.bf16.mxu0 %v3917_v24 }
 0xc31   : > { %3477 = vmatpush3.bf16.msra.mxu0 %v3918_v25 }
 0xcd4   : > { %v2642_v38 = vpop.f32.mrf.mxu0 }
 0xcd5   : > { %v2643_v39 = vadd.f32 %v3343_v37, %v2642_v38 }
 0xcd6   : > { %v3658_v40 = vpop.f32.mrf.mxu0 }
 0xcd7   : > { %v2648_v41 = vadd.f32 %v2643_v39, %v4882_v27  ;;  %v3888_v27 = vld [vmem:[#allocation16 + $0x40] ss:$8 sps:$4 sm:$0xff]  }
 0xcd8   : > { %v2645_v42 = vpop.f32.mrf.mxu0  ;;  %2792 = vmatpush1.bf16.msra.mxu1 %v3888_v27 }
 0xcd9   : > { %2651 = vadd.xlane.f32.xlu0 %v2648_v41  ;;  %2793 = vmatprep.subr.bf16.mxu1 %v3893_v57  ;;  %v3370_v42 = vld [vmem:[%s5144_s27] ss:$0 sm:$0xff] }
 0xcda   : > { %v3659_v44 = vpop.f32.mrf.mxu0 }
 0xcdc   : > { %2794 = vmatpush1.bf16.msra.mxu1 %v3891_v58  ;;  %v3388_v58 = vld [vmem:[%s5147_s1] ss:$0 sm:$0xff] }
 0xcdd   : > { %2795 = vmatprep.subr.bf16.mxu1 %v3896_v23 }
 0xce0   : > { %2796 = vmatpush1.bf16.msra.mxu1 %v3894_v59 }
 0xce1   : > { %2797 = vmatprep.subr.bf16.mxu1 %v3899_v60 }
 0xce4   : > { %2798 = vmatpush1.bf16.msra.mxu1 %v3897_v43 }
 0xce5   : > { %2799 = vmatprep.subr.bf16.mxu1 %v3902_v61 }
 0xce8   : > { %2800 = vmatpush1.bf16.msra.mxu1 %v3900_v62 }
 0xd62   : > { %v2652_v49 = vpop.xlane.xlu0 %2651 }
 0xd63   : > { %v2653_v50 = vmul.f32 0.0078125, %v2652_v49 }
 0xd65   : > { %v2654_v51 = vsub.f32 %v2648_v41, %v2653_v50 }
 0xd67   : > { %v2655_v53 = vmul.f32 %v2654_v51, %v2654_v51 }
 0xd69   : > { %2656 = vadd.xlane.f32.xlu1 %v2655_v53 }
 0xdf2   : > { %v2657_v12 = vpop.xlane.xlu1 %2656 }
 0xdf3   : > { %v2658_v0 = vmul.f32 0.0078125, %v2657_v12 }
 0xdf5   : > { %v2659_v13 = vadd.f32 1e-05, %v2658_v0 }
 0xdf7   : > { %3953 = vrsqrt.f32 %v2659_v13 }
 0xe04   : > { %v3954_v14 = vpop.eup %3953 }
 0xe05   : > { %v2661_v16 = vmul.f32 %v3954_v14, %v2654_v51 }
 0xe07   : > { %v2668_v18 = vmul.f32 %v3352_v15, %v2661_v16 }
 0xe09   : > { %v2675_v19 = vadd.f32 %v3353_v17, %v2668_v18 }
 0xe0b   : > { %v2676_v20 = vpack.c.bf16 %v2675_v19, %v2675_v19 }
 0xe0d   : > { %2818 = vmatmul.mubr.bf16.vlgmr.msra.gmra.mxu1 %v2676_v20 }
 0xecd   : > { %v2819_v31 = vpop.f32.mrf.mxu1 }
 0xece   : > { %v2820_v1 = vadd.f32 %v2819_v31, %v2698_v28 }
 0xecf   : > { %v2821_v33 = vpop.f32.mrf.mxu1 }
 0xed0   : > { %v2822_v34 = vadd.f32 %v2821_v33, %v2702_v29  ;;  %v2826_v35 = vmax.f32 %v2820_v1, 0.0 }
 0xed1   : > { %v2823_v36 = vpop.f32.mrf.mxu1 }
 0xed2   : > { %v2827_v37 = vmax.f32 %v2822_v34, 0.0  ;;  %v2828_v40 = vpack.c.bf16 %v2826_v35, %v2826_v35 }
 0xed3   : > { %v2824_v38 = vpop.f32.mrf.mxu1 }
 0xed4   : > { %v2829_v39 = vpack.c.bf16 %v2827_v37, %v2827_v37 }
 0xed6   : > { %2997 = vmatprep.mubr.bf16.mxu0 %v2829_v39 }
 0xed7   : > { %2998 = vmatmul.mubr.bf16.vlgmr.msra.gmra.mxu0 %v2828_v40 }
 0xf97   : > { %v3478_v41 = vpop.f32.mrf.mxu0 }
 0xf99   : > { %v3479_v30 = vpop.f32.mrf.mxu0 }
 0xf9a   : > { %v3480_v44 = vadd.f32 %v3479_v30, %v3478_v41 }
 0xf9b   : > { %v3481_v32 = vpop.f32.mrf.mxu0 }
 0xf9c   : > { %v3000_v45 = vadd.f32 %v3480_v44, %v3370_v42 }
 0xf9d   : > { %v3482_v46 = vpop.f32.mrf.mxu0 }
 0xf9e   : > { %v3005_v47 = vadd.f32 %v3000_v45, %v2675_v19 }
 0xfa0   : > { %3008 = vadd.xlane.f32.xlu0 %v3005_v47 }
0x1029   : > { %v3009_v48 = vpop.xlane.xlu0 %3008 }
0x102a   : > { %v3010_v49 = vmul.f32 0.0078125, %v3009_v48 }
0x102c   : > { %v3011_v50 = vsub.f32 %v3005_v47, %v3010_v49 }
0x102e   : > { %v3012_v51 = vmul.f32 %v3011_v50, %v3011_v50 }
0x1030   : > { %3013 = vadd.xlane.f32.xlu0 %v3012_v51 }
0x10b9   : > { %v3014_v53 = vpop.xlane.xlu0 %3013 }
0x10ba   : > { %v3015_v54 = vmul.f32 0.0078125, %v3014_v53 }
0x10bc   : > { %v3016_v55 = vadd.f32 1e-05, %v3015_v54 }
0x10be   : > { %3955 = vrsqrt.f32 %v3016_v55 }
0x10cb   : > { %v3956_v27 = vpop.eup %3955 }
0x10cc   : > { %v3018_v57 = vmul.f32 %v3956_v27, %v3011_v50 }
0x10ce   : > { %v3025_v23 = vmul.f32 %v3387_v56, %v3018_v57 }
0x10d0   : > { %v3032_v59 = vadd.f32 %v3388_v58, %v3025_v23 }
0x10d2   : > { %3033 = vst [vmem:[%s939_s7] sm:$0xff] %v3032_v59 }
0x10d3   : > { %4236 = shalt.err (!%p4233_p7)
}
0x10d4   : > { %s4237_s17 = scalar_lea.hbm %s3046_s30, 128  ;;  %s4241_s8 = scalar_lea.hbm %s5148_s25, 256 }
0x10d5   : > { %p4238_p8 = scmp.ne.s32.totalorder %s3046_s30, %s4237_s17  ;;  %p4242_p2 = scmp.lt.s32.totalorder %s3046_s30, %s5148_s25 }
0x10d6   : > { %p4243_p10 = scmp.lt.s32.totalorder %s4241_s8, %s4237_s17 }
0x10d7   : > { %p4239_p9 = pnand %p4238_p8, %p5149_p3 }
0x10d8   : > { %p4244_p4 = por %p4243_p10, %p4242_p2 }
0x10d9   : > { %p4240_p0 = pneg %p4239_p9 }
0x10db   : > { %p4245_p5 = pnand %p4244_p4, %p4240_p0 }
0x10dd   : > { %4248 = shalt.err (!%p4245_p5)
}
0x10de   : > { %3694 = dma.vmem_to_hbm [thread:$0]  (%p5149_p3), %s3049_s6, 128, %s3046_s30, %s3035_s10  }
0x10df PF: > { %s5150_s5 = sld [smem:[#allocation27_spill]]  ;;  %p5153_p1 = scmp.ge.s32.totalorder %s4307_s28, 2 }
0x10e0   : > { %s5151_s14 = sld [smem:[#allocation32_spill]] }
0x10e5   : > { %s3060_s1 = sand.u32 1, %s5150_s5  }
0x10e6   : > { %p5152_p13 = scmp.ne.s32.totalorder %s5151_s14, 0  ;;  %s3061_s21 = scalar_lea.sflag [#allocation4], %s3060_s1 }
0x10e8   : > { %p3729_p11 = pnand %p5153_p1, %p5152_p13 }
0x10ea   : > { %p3730_p12 = pneg %p3729_p11 }
0x10ec   : > { %4290 = dma.done.wait (%p3730_p12), %s3061_s21, 128  }
0x10ed   : > { %4292 = vsyncadd (%p3730_p12), %s3061_s21, 4294967168  ;;  %s5154_s28 = sld [smem:[#allocation29_spill]]  ;;  %s5157_s5 = smov %s4299_s26 }
0x10ee   : > { %s5155_s7 = sld [smem:[#allocation28_spill]] }
0x10ef   : > { %s5156_s27 = sld [smem:[#allocation30_spill]] }
0x10f3   : > { %p44_p6 = scmp.ge.s32.totalorder %s5154_s28, 4  }
0x10f4   : > { %s5158_s26 = smov %s5155_s7 }
0x10f5   :  { %46 = sbr.rel (!%p44_p6) target bundleno = 32 (0x20), region = 216 }
0x10fa   :  { %3066 = vsyncpa [#allocation3], 1 }
0x10fb   :  { %3068 = vsyncpa [#allocation3 + $0x1], 1 }
0x10fc   :  { %3069 = vsyncpa [#allocation6], 1 }
0x10fd   :  { %3071 = vsyncpa [#allocation6 + $0x1], 1 }
0x10fe   :  { %3072 = vsyncpa [#allocation9], 1 }
0x10ff   :  { %3073 = vsyncpa [#allocation12], 1 }
0x1100   :  { %3074 = vsyncpa [#allocation15], 1 }
0x1101   :  { %3075 = vsyncpa [#allocation18], 1 }
0x1102   :  { %3076 = vsyncpa [#allocation4], 1 }
0x1103   :  { %3078 = vsyncpa [#allocation4 + $0x1], 1 }

</bundles_post_ra>
